<compile_context>
chip_gen: v5e
topology: v5e:2x2
jax: 0.10.0
libtpu: 0.0.40
codegen_flags: <defaults>
</compile_context>

<pallas_src>
import functools

import jax
import jax.numpy as jnp
from jax.experimental import pallas as pl
from jax.experimental.pallas import tpu as pltpu

LANES = 128                       # pad every feature dim to full vreg lane width
VMEM_LIMIT = 32 * 1024 * 1024     # explicit scoped-VMEM budget, safe on v5e/v6e/v7x


# ----------------------------------------------------------------------------
# Path A: fully fused forward; grid over a batch of graphs (parallel axis)
# ----------------------------------------------------------------------------
def _gin_fused_kernel(x_ref, adj_ref, w_ref, b_ref, o_ref, *,
                      num_convs, mlp_layers):
    # x_ref:   (1, N, F_in)   true-width node features (no host-side padding)
    # adj_ref: (1, N, N)      dense 0/1 adjacency, no self loops
    # w_ref:   (num_convs*mlp_layers, 128, 128)  BN-folded, zero-padded
    # b_ref:   (num_convs*mlp_layers, 1, 128)    BN-folded, zero-padded
    adj = adj_ref[0]
    h = x_ref[0]
    idx = 0
    for c in range(num_convs):
        # GIN aggregation, self loop folded IN-KERNEL:
        #   (1 + eps) * h + adj @ h   with eps = 0   (no host-side adj + I pass)
        h = h + jnp.dot(adj, h, preferred_element_type=jnp.float32)
        for l in range(mlp_layers):
            w = w_ref[idx]
            if h.shape[-1] != w.shape[0]:
                # First Linear: only the first F_in rows of the zero-padded
                # weight are meaningful -> static slice (F_in multiple of 8).
                w = w[:h.shape[-1], :]
            h = jnp.dot(h, w, preferred_element_type=jnp.float32) + b_ref[idx]
            # BN is pre-folded into W/b; ReLU everywhere except the network's
            # very last Linear.  Dropout is identity in eval mode.
            if not (c == num_convs - 1 and l == mlp_layers - 1):
                h = jnp.maximum(h, 0.0)
            idx += 1
    o_ref[0] = h


def gin_forward_fused(x, adj, w_stack, b_stack, *, num_convs, mlp_layers,
                      out_width):
    g, n, fin = x.shape
    nl, pad, _ = w_stack.shape
    kern = functools.partial(_gin_fused_kernel, num_convs=num_convs,
                             mlp_layers=mlp_layers)
    flops = 2 * g * num_convs * n * n * pad + 2 * g * nl * n * pad * pad
    bytes_accessed = 4 * (adj.size + x.size + w_stack.size + b_stack.size
                          + g * n * pad)
    out = pl.pallas_call(
        kern,
        out_shape=jax.ShapeDtypeStruct((g, n, pad), jnp.float32),
        grid=(g,),
        in_specs=[
            pl.BlockSpec((1, n, fin), lambda i: (i, 0, 0)),
            pl.BlockSpec((1, n, n), lambda i: (i, 0, 0)),
            # constant index_map -> weight/bias stacks are DMA'd once
            pl.BlockSpec((nl, pad, pad), lambda i: (0, 0, 0)),
            pl.BlockSpec((nl, 1, pad), lambda i: (0, 0, 0)),
        ],
        out_specs=pl.BlockSpec((1, n, pad), lambda i: (i, 0, 0)),
        compiler_params=pltpu.CompilerParams(
            dimension_semantics=("parallel",),      # graph axis -> v7x 2 TCs
            vmem_limit_bytes=VMEM_LIMIT),
        cost_estimate=pl.CostEstimate(flops=flops, transcendentals=0,
                                      bytes_accessed=bytes_accessed),
    )(x, adj, w_stack, b_stack)
    return out[..., :out_width]


# ----------------------------------------------------------------------------
# Path B: row/K-tiled per-layer kernel for graphs too large for whole-VMEM
# ----------------------------------------------------------------------------
def _gin_layer_tiled_kernel(xr_ref, adj_ref, xk_ref, w_ref, b_ref, o_ref,
                            acc_ref, *, mlp_layers, last_conv):
    k = pl.program_id(1)

    @pl.when(k == 0)
    def _():
        acc_ref[...] = xr_ref[...]        # self-loop term (1 + eps) * x, eps = 0

    acc_ref[...] += jnp.dot(adj_ref[...], xk_ref[...],
                            preferred_element_type=jnp.float32)

    @pl.when(k == pl.num_programs(1) - 1)
    def _():
        h = acc_ref[...]
        for l in range(mlp_layers):
            h = jnp.dot(h, w_ref[l],
                        preferred_element_type=jnp.float32) + b_ref[l]
            if not (last_conv and l == mlp_layers - 1):
                h = jnp.maximum(h, 0.0)
        o_ref[...] = h


def gin_forward_tiled(x, adj, w_stack, b_stack, *, num_convs, mlp_layers,
                      out_width, tm=128, tk=128):
    n, fin = x.shape
    pad = w_stack.shape[-1]
    assert n % tm == 0 and n % tk == 0, "demo requires N multiple of tile size"
    # One tiny one-time pad of the layer-0 features to the lane-dense width
    # (O(N*128) bytes, negligible vs the N^2 adjacency stream).
    h = jnp.zeros((n, pad), jnp.float32).at[:, :fin].set(x)
    for c in range(num_convs):
        w_c = w_stack[c * mlp_layers:(c + 1) * mlp_layers]
        b_c = b_stack[c * mlp_layers:(c + 1) * mlp_layers]
        kern = functools.partial(_gin_layer_tiled_kernel,
                                 mlp_layers=mlp_layers,
                                 last_conv=(c == num_convs - 1))
        flops = 2 * n * n * pad + 2 * mlp_layers * n * pad * pad
        bytes_accessed = 4 * (adj.size + 3 * n * pad + w_c.size + b_c.size)
        h = pl.pallas_call(
            kern,
            out_shape=jax.ShapeDtypeStruct((n, pad), jnp.float32),
            grid=(n // tm, n // tk),
            in_specs=[
                pl.BlockSpec((tm, pad), lambda i, k: (i, 0)),   # self-loop rows
                pl.BlockSpec((tm, tk), lambda i, k: (i, k)),    # adj tile
                pl.BlockSpec((tk, pad), lambda i, k: (k, 0)),   # neighbor rows
                pl.BlockSpec((mlp_layers, pad, pad), lambda i, k: (0, 0, 0)),
                pl.BlockSpec((mlp_layers, 1, pad), lambda i, k: (0, 0, 0)),
            ],
            out_specs=pl.BlockSpec((tm, pad), lambda i, k: (i, 0)),
            scratch_shapes=[pltpu.VMEM((tm, pad), jnp.float32)],
            compiler_params=pltpu.CompilerParams(
                dimension_semantics=("parallel", "arbitrary"),
                vmem_limit_bytes=VMEM_LIMIT),
            cost_estimate=pl.CostEstimate(flops=flops, transcendentals=0,
                                          bytes_accessed=bytes_accessed),
        )(h, adj, h, w_c, b_c)
    # TODO(synk): for N where even a (N,128) activation slab stresses VMEM,
    # additionally tile the MLP's row dimension (it is row-independent).
    return h[:, :out_width]


# ----------------------------------------------------------------------------
# Deterministic parameter construction (mirrors PyTorch default initializers)
# ----------------------------------------------------------------------------
def init_linear(key, fin, fout):
    kw, kb = jax.random.split(key)
    bound = 1.0 / (fin ** 0.5)
    # stored as (fin, fout) so the kernel computes x @ W (== torch x @ W.T)
    w = jax.random.uniform(kw, (fin, fout), jnp.float32, -bound, bound)
    b = jax.random.uniform(kb, (1, fout), jnp.float32, -bound, bound)
    return w, b


def init_bn(f, eps=1e-5):
    # PyTorch BatchNorm1d after reset_parameters(): gamma=1, beta=0,
    # running_mean=0, running_var=1.  Eval mode folds into scale/shift.
    gamma = jnp.ones((1, f), jnp.float32)
    beta = jnp.zeros((1, f), jnp.float32)
    rmean = jnp.zeros((1, f), jnp.float32)
    rvar = jnp.ones((1, f), jnp.float32)
    scale = gamma / jnp.sqrt(rvar + eps)
    shift = beta - rmean * scale
    return scale, shift


def init_mlp(key, fin, fhid, fout, num_layers):
    dims = [fin, fhid] + [fhid] * (num_layers - 2) + [fout]
    keys = jax.random.split(key, num_layers)
    lins = [init_linear(keys[i], dims[i], dims[i + 1]) for i in range(num_layers)]
    bns = [init_bn(dims[i + 1]) for i in range(num_layers - 1)]
    return {"lins": lins, "bns": bns}


def init_gin(key, in_ch, hid_ch, out_ch, num_layers):
    keys = jax.random.split(key, num_layers)
    convs = [init_mlp(keys[0], in_ch, hid_ch, hid_ch, num_layers)]
    for i in range(num_layers - 2):
        convs.append(init_mlp(keys[1 + i], hid_ch, hid_ch, hid_ch, num_layers))
    # Exactly as in the PyTorch code: last conv's MLP is MLP(hidden, out, hidden)
    convs.append(init_mlp(keys[num_layers - 1], hid_ch, out_ch, hid_ch, num_layers))
    bns = [init_bn(hid_ch) for _ in range(num_layers - 1)]
    return {"convs": convs, "bns": bns}


# ----------------------------------------------------------------------------
# Parameter-build-time BN folding + 128-lane zero padding + stacking
# ----------------------------------------------------------------------------
def build_fused_params(params, pad=LANES):
    convs, outer_bns = params["convs"], params["bns"]
    n_convs = len(convs)
    ws, bs = [], []
    for c, conv in enumerate(convs):
        lins, inner_bns = conv["lins"], conv["bns"]
        n_lin = len(lins)
        for j, (w, b) in enumerate(lins):
            if j < n_lin - 1:
                scale, shift = inner_bns[j]          # MLP-internal BN
            elif c < n_convs - 1:
                scale, shift = outer_bns[c]          # outer per-GIN-layer BN
            else:
                scale, shift = None, None            # final Linear: no BN/ReLU
            if scale is not None:
                w = w * scale                        # (fin,fout) * (1,fout)
                b = b * scale + shift
            fin, fout = w.shape
            # zero-padded so garbage never leaks into padded lanes downstream
            wp = jnp.zeros((pad, pad), jnp.float32).at[:fin, :fout].set(w)
            bp = jnp.zeros((1, pad), jnp.float32).at[:, :fout].set(b)
            ws.append(wp)
            bs.append(bp)
    return jnp.stack(ws), jnp.stack(bs)   # (L, 128, 128), (L, 1, 128)


# ----------------------------------------------------------------------------
# Pure-jnp reference (unfused, unfolded) mirroring the PyTorch spec exactly
# ----------------------------------------------------------------------------
def gin_reference(x, adj, params):
    def mlp_ref(x, p):
        for i, (w, b) in enumerate(p["lins"][:-1]):
            s, sh = p["bns"][i]
            x = jnp.maximum((x @ w + b) * s + sh, 0.0)
        w, b = p["lins"][-1]
        return x @ w + b

    for i, conv in enumerate(params["convs"][:-1]):
        h = adj @ x + x
        x = mlp_ref(h, conv)
        s, sh = params["bns"][i]
        x = jnp.maximum(x * s + sh, 0.0)
    h = adj @ x + x
    return mlp_ref(h, params["convs"][-1])


if __name__ == "__main__":
    IN_CH, HID_CH, OUT_CH, NUM_LAYERS = 16, 32, 8, 3

    key = jax.random.PRNGKey(0)
    kparams, ka, kb = jax.random.split(key, 3)
    params = init_gin(kparams, IN_CH, HID_CH, OUT_CH, NUM_LAYERS)
    w_stack, b_stack = build_fused_params(params)

    # ---------- Path A: batch of small graphs, fully fused ----------
    G, N = 2, 128                          # lane-dense adjacency, M = K = 128
    kx, kadj = jax.random.split(ka)
    x = jax.random.normal(kx, (G, N, IN_CH), jnp.float32)
    a = (jax.random.uniform(kadj, (G, N, N)) < 0.1).astype(jnp.float32)
    adj = jnp.maximum(a, jnp.swapaxes(a, -1, -2)) * (1.0 - jnp.eye(N, dtype=jnp.float32))

    fwd = jax.jit(functools.partial(
        gin_forward_fused, num_convs=NUM_LAYERS, mlp_layers=NUM_LAYERS,
        out_width=HID_CH))
    out = jax.block_until_ready(fwd(x, adj, w_stack, b_stack))
    ref = jnp.stack([gin_reference(x[g], adj[g], params) for g in range(G)])
    assert out.shape == (G, N, HID_CH), out.shape
    assert jnp.allclose(out, ref, atol=1e-3, rtol=1e-3), (
        "fused mismatch: max |diff| = %s" % jnp.abs(out - ref).max())

    # ---------- Path B: one larger graph, row/K-tiled per GIN layer ----------
    N2 = 256
    kx2, kadj2 = jax.random.split(kb)
    x2 = jax.random.normal(kx2, (N2, IN_CH), jnp.float32)
    a2 = (jax.random.uniform(kadj2, (N2, N2)) < 0.05).astype(jnp.float32)
    adj2 = jnp.maximum(a2, a2.T) * (1.0 - jnp.eye(N2, dtype=jnp.float32))

    fwd2 = jax.jit(functools.partial(
        gin_forward_tiled, num_convs=NUM_LAYERS, mlp_layers=NUM_LAYERS,
        out_width=HID_CH, tm=128, tk=128))
    out2 = jax.block_until_ready(fwd2(x2, adj2, w_stack, b_stack))
    ref2 = gin_reference(x2, adj2, params)
    assert out2.shape == (N2, HID_CH), out2.shape
    assert jnp.allclose(out2, ref2, atol=1e-3, rtol=1e-3), (
        "tiled mismatch: max |diff| = %s" % jnp.abs(out2 - ref2).max())

    print("KERNEL_OK")
</pallas_src>

<mosaic_0001>
module attributes {stable_mosaic.version = 11 : i64} {
  func.func @_gin_fused_kernel(%arg0: i32, %arg1: memref<1x128x16xf32, #tpu.memory_space<vmem>>, %arg2: memref<1x128x128xf32, #tpu.memory_space<vmem>>, %arg3: memref<9x128x128xf32, #tpu.memory_space<vmem>>, %arg4: memref<9x1x128xf32, #tpu.memory_space<vmem>>, %arg5: memref<1x128x128xf32, #tpu.memory_space<vmem>>) attributes {dimension_semantics = [#tpu.dimension_semantics<parallel>], iteration_bounds = array<i64: 2>, scalar_prefetch = 0 : i64, scratch_operands = 0 : i64, tpu.core_type = #tpu.core_type<tc>, window_params = [{transform_indices = @transform_0, window_bounds = array<i64: 1, 128, 16>}, {transform_indices = @transform_1, window_bounds = array<i64: 1, 128, 128>}, {pipeline_mode = #tpu.pipeline_mode<synchronous>, transform_indices = @transform_2, window_bounds = array<i64: 9, 128, 128>}, {pipeline_mode = #tpu.pipeline_mode<synchronous>, transform_indices = @transform_3, window_bounds = array<i64: 9, 1, 128>}, {transform_indices = @transform_4, window_bounds = array<i64: 1, 128, 128>}]} {
    %c0 = arith.constant 0 : index
    %c0_0 = arith.constant 0 : index
    %c0_1 = arith.constant 0 : index
    %0 = vector.load %arg2[%c0, %c0_0, %c0_1] : memref<1x128x128xf32, #tpu.memory_space<vmem>>, vector<1x128x128xf32>
    %1 = vector.shape_cast %0 : vector<1x128x128xf32> to vector<128x128xf32>
    %c0_2 = arith.constant 0 : index
    %c0_3 = arith.constant 0 : index
    %c0_4 = arith.constant 0 : index
    %2 = vector.load %arg1[%c0_2, %c0_3, %c0_4] : memref<1x128x16xf32, #tpu.memory_space<vmem>>, vector<1x128x16xf32>
    %3 = vector.shape_cast %2 : vector<1x128x16xf32> to vector<128x16xf32>
    %cst = arith.constant dense<0.000000e+00> : vector<128x16xf32>
    %4 = tpu.matmul %1, %3, %cst {dimension_numbers = #tpu.dot_dimension_numbers<[1], [0], [0], [1], [0, 0, 1, 1], [], []>} : vector<128x128xf32>, vector<128x16xf32>, vector<128x16xf32> -> vector<128x16xf32>
    %5 = arith.addf %3, %4 : vector<128x16xf32>
    %c0_5 = arith.constant 0 : index
    %c0_6 = arith.constant 0 : index
    %c0_7 = arith.constant 0 : index
    %6 = vector.load %arg3[%c0_5, %c0_6, %c0_7] : memref<9x128x128xf32, #tpu.memory_space<vmem>>, vector<1x128x128xf32>
    %7 = vector.shape_cast %6 : vector<1x128x128xf32> to vector<128x128xf32>
    %8 = vector.extract_strided_slice %7 {offsets = [0, 0], sizes = [16, 128], strides = [1, 1]} : vector<128x128xf32> to vector<16x128xf32>
    %cst_8 = arith.constant dense<0.000000e+00> : vector<128x128xf32>
    %9 = tpu.matmul %5, %8, %cst_8 {dimension_numbers = #tpu.dot_dimension_numbers<[1], [0], [0], [1], [0, 0, 1, 1], [], []>} : vector<128x16xf32>, vector<16x128xf32>, vector<128x128xf32> -> vector<128x128xf32>
    %c0_9 = arith.constant 0 : index
    %c0_10 = arith.constant 0 : index
    %c0_11 = arith.constant 0 : index
    %10 = vector.load %arg4[%c0_9, %c0_10, %c0_11] : memref<9x1x128xf32, #tpu.memory_space<vmem>>, vector<1x1x128xf32>
    %11 = vector.shape_cast %10 : vector<1x1x128xf32> to vector<1x128xf32>
    %12 = vector.broadcast %11 : vector<1x128xf32> to vector<128x128xf32>
    %13 = arith.addf %9, %12 : vector<128x128xf32>
    %cst_12 = arith.constant 0.000000e+00 : f32
    %14 = vector.broadcast %cst_12 : f32 to vector<128x128xf32>
    %15 = arith.maximumf %13, %14 : vector<128x128xf32>
    %c1 = arith.constant 1 : index
    %c0_13 = arith.constant 0 : index
    %c0_14 = arith.constant 0 : index
    %16 = vector.load %arg3[%c1, %c0_13, %c0_14] : memref<9x128x128xf32, #tpu.memory_space<vmem>>, vector<1x128x128xf32>
    %17 = vector.shape_cast %16 : vector<1x128x128xf32> to vector<128x128xf32>
    %cst_15 = arith.constant dense<0.000000e+00> : vector<128x128xf32>
    %18 = tpu.matmul %15, %17, %cst_15 {dimension_numbers = #tpu.dot_dimension_numbers<[1], [0], [0], [1], [0, 0, 1, 1], [], []>} : vector<128x128xf32>, vector<128x128xf32>, vector<128x128xf32> -> vector<128x128xf32>
    %c1_16 = arith.constant 1 : index
    %c0_17 = arith.constant 0 : index
    %c0_18 = arith.constant 0 : index
    %19 = vector.load %arg4[%c1_16, %c0_17, %c0_18] : memref<9x1x128xf32, #tpu.memory_space<vmem>>, vector<1x1x128xf32>
    %20 = vector.shape_cast %19 : vector<1x1x128xf32> to vector<1x128xf32>
    %21 = vector.broadcast %20 : vector<1x128xf32> to vector<128x128xf32>
    %22 = arith.addf %18, %21 : vector<128x128xf32>
    %cst_19 = arith.constant 0.000000e+00 : f32
    %23 = vector.broadcast %cst_19 : f32 to vector<128x128xf32>
    %24 = arith.maximumf %22, %23 : vector<128x128xf32>
    %c2 = arith.constant 2 : index
    %c0_20 = arith.constant 0 : index
    %c0_21 = arith.constant 0 : index
    %25 = vector.load %arg3[%c2, %c0_20, %c0_21] : memref<9x128x128xf32, #tpu.memory_space<vmem>>, vector<1x128x128xf32>
    %26 = vector.shape_cast %25 : vector<1x128x128xf32> to vector<128x128xf32>
    %cst_22 = arith.constant dense<0.000000e+00> : vector<128x128xf32>
    %27 = tpu.matmul %24, %26, %cst_22 {dimension_numbers = #tpu.dot_dimension_numbers<[1], [0], [0], [1], [0, 0, 1, 1], [], []>} : vector<128x128xf32>, vector<128x128xf32>, vector<128x128xf32> -> vector<128x128xf32>
    %c2_23 = arith.constant 2 : index
    %c0_24 = arith.constant 0 : index
    %c0_25 = arith.constant 0 : index
    %28 = vector.load %arg4[%c2_23, %c0_24, %c0_25] : memref<9x1x128xf32, #tpu.memory_space<vmem>>, vector<1x1x128xf32>
    %29 = vector.shape_cast %28 : vector<1x1x128xf32> to vector<1x128xf32>
    %30 = vector.broadcast %29 : vector<1x128xf32> to vector<128x128xf32>
    %31 = arith.addf %27, %30 : vector<128x128xf32>
    %cst_26 = arith.constant 0.000000e+00 : f32
    %32 = vector.broadcast %cst_26 : f32 to vector<128x128xf32>
    %33 = arith.maximumf %31, %32 : vector<128x128xf32>
    %cst_27 = arith.constant dense<0.000000e+00> : vector<128x128xf32>
    %34 = tpu.matmul %1, %33, %cst_27 {dimension_numbers = #tpu.dot_dimension_numbers<[1], [0], [0], [1], [0, 0, 1, 1], [], []>} : vector<128x128xf32>, vector<128x128xf32>, vector<128x128xf32> -> vector<128x128xf32>
    %35 = arith.addf %33, %34 : vector<128x128xf32>
    %c3 = arith.constant 3 : index
    %c0_28 = arith.constant 0 : index
    %c0_29 = arith.constant 0 : index
    %36 = vector.load %arg3[%c3, %c0_28, %c0_29] : memref<9x128x128xf32, #tpu.memory_space<vmem>>, vector<1x128x128xf32>
    %37 = vector.shape_cast %36 : vector<1x128x128xf32> to vector<128x128xf32>
    %cst_30 = arith.constant dense<0.000000e+00> : vector<128x128xf32>
    %38 = tpu.matmul %35, %37, %cst_30 {dimension_numbers = #tpu.dot_dimension_numbers<[1], [0], [0], [1], [0, 0, 1, 1], [], []>} : vector<128x128xf32>, vector<128x128xf32>, vector<128x128xf32> -> vector<128x128xf32>
    %c3_31 = arith.constant 3 : index
    %c0_32 = arith.constant 0 : index
    %c0_33 = arith.constant 0 : index
    %39 = vector.load %arg4[%c3_31, %c0_32, %c0_33] : memref<9x1x128xf32, #tpu.memory_space<vmem>>, vector<1x1x128xf32>
    %40 = vector.shape_cast %39 : vector<1x1x128xf32> to vector<1x128xf32>
    %41 = vector.broadcast %40 : vector<1x128xf32> to vector<128x128xf32>
    %42 = arith.addf %38, %41 : vector<128x128xf32>
    %cst_34 = arith.constant 0.000000e+00 : f32
    %43 = vector.broadcast %cst_34 : f32 to vector<128x128xf32>
    %44 = arith.maximumf %42, %43 : vector<128x128xf32>
    %c4 = arith.constant 4 : index
    %c0_35 = arith.constant 0 : index
    %c0_36 = arith.constant 0 : index
    %45 = vector.load %arg3[%c4, %c0_35, %c0_36] : memref<9x128x128xf32, #tpu.memory_space<vmem>>, vector<1x128x128xf32>
    %46 = vector.shape_cast %45 : vector<1x128x128xf32> to vector<128x128xf32>
    %cst_37 = arith.constant dense<0.000000e+00> : vector<128x128xf32>
    %47 = tpu.matmul %44, %46, %cst_37 {dimension_numbers = #tpu.dot_dimension_numbers<[1], [0], [0], [1], [0, 0, 1, 1], [], []>} : vector<128x128xf32>, vector<128x128xf32>, vector<128x128xf32> -> vector<128x128xf32>
    %c4_38 = arith.constant 4 : index
    %c0_39 = arith.constant 0 : index
    %c0_40 = arith.constant 0 : index
    %48 = vector.load %arg4[%c4_38, %c0_39, %c0_40] : memref<9x1x128xf32, #tpu.memory_space<vmem>>, vector<1x1x128xf32>
    %49 = vector.shape_cast %48 : vector<1x1x128xf32> to vector<1x128xf32>
    %50 = vector.broadcast %49 : vector<1x128xf32> to vector<128x128xf32>
    %51 = arith.addf %47, %50 : vector<128x128xf32>
    %cst_41 = arith.constant 0.000000e+00 : f32
    %52 = vector.broadcast %cst_41 : f32 to vector<128x128xf32>
    %53 = arith.maximumf %51, %52 : vector<128x128xf32>
    %c5 = arith.constant 5 : index
    %c0_42 = arith.constant 0 : index
    %c0_43 = arith.constant 0 : index
    %54 = vector.load %arg3[%c5, %c0_42, %c0_43] : memref<9x128x128xf32, #tpu.memory_space<vmem>>, vector<1x128x128xf32>
    %55 = vector.shape_cast %54 : vector<1x128x128xf32> to vector<128x128xf32>
    %cst_44 = arith.constant dense<0.000000e+00> : vector<128x128xf32>
    %56 = tpu.matmul %53, %55, %cst_44 {dimension_numbers = #tpu.dot_dimension_numbers<[1], [0], [0], [1], [0, 0, 1, 1], [], []>} : vector<128x128xf32>, vector<128x128xf32>, vector<128x128xf32> -> vector<128x128xf32>
    %c5_45 = arith.constant 5 : index
    %c0_46 = arith.constant 0 : index
    %c0_47 = arith.constant 0 : index
    %57 = vector.load %arg4[%c5_45, %c0_46, %c0_47] : memref<9x1x128xf32, #tpu.memory_space<vmem>>, vector<1x1x128xf32>
    %58 = vector.shape_cast %57 : vector<1x1x128xf32> to vector<1x128xf32>
    %59 = vector.broadcast %58 : vector<1x128xf32> to vector<128x128xf32>
    %60 = arith.addf %56, %59 : vector<128x128xf32>
    %cst_48 = arith.constant 0.000000e+00 : f32
    %61 = vector.broadcast %cst_48 : f32 to vector<128x128xf32>
    %62 = arith.maximumf %60, %61 : vector<128x128xf32>
    %cst_49 = arith.constant dense<0.000000e+00> : vector<128x128xf32>
    %63 = tpu.matmul %1, %62, %cst_49 {dimension_numbers = #tpu.dot_dimension_numbers<[1], [0], [0], [1], [0, 0, 1, 1], [], []>} : vector<128x128xf32>, vector<128x128xf32>, vector<128x128xf32> -> vector<128x128xf32>
    %64 = arith.addf %62, %63 : vector<128x128xf32>
    %c6 = arith.constant 6 : index
    %c0_50 = arith.constant 0 : index
    %c0_51 = arith.constant 0 : index
    %65 = vector.load %arg3[%c6, %c0_50, %c0_51] : memref<9x128x128xf32, #tpu.memory_space<vmem>>, vector<1x128x128xf32>
    %66 = vector.shape_cast %65 : vector<1x128x128xf32> to vector<128x128xf32>
    %cst_52 = arith.constant dense<0.000000e+00> : vector<128x128xf32>
    %67 = tpu.matmul %64, %66, %cst_52 {dimension_numbers = #tpu.dot_dimension_numbers<[1], [0], [0], [1], [0, 0, 1, 1], [], []>} : vector<128x128xf32>, vector<128x128xf32>, vector<128x128xf32> -> vector<128x128xf32>
    %c6_53 = arith.constant 6 : index
    %c0_54 = arith.constant 0 : index
    %c0_55 = arith.constant 0 : index
    %68 = vector.load %arg4[%c6_53, %c0_54, %c0_55] : memref<9x1x128xf32, #tpu.memory_space<vmem>>, vector<1x1x128xf32>
    %69 = vector.shape_cast %68 : vector<1x1x128xf32> to vector<1x128xf32>
    %70 = vector.broadcast %69 : vector<1x128xf32> to vector<128x128xf32>
    %71 = arith.addf %67, %70 : vector<128x128xf32>
    %cst_56 = arith.constant 0.000000e+00 : f32
    %72 = vector.broadcast %cst_56 : f32 to vector<128x128xf32>
    %73 = arith.maximumf %71, %72 : vector<128x128xf32>
    %c7 = arith.constant 7 : index
    %c0_57 = arith.constant 0 : index
    %c0_58 = arith.constant 0 : index
    %74 = vector.load %arg3[%c7, %c0_57, %c0_58] : memref<9x128x128xf32, #tpu.memory_space<vmem>>, vector<1x128x128xf32>
    %75 = vector.shape_cast %74 : vector<1x128x128xf32> to vector<128x128xf32>
    %cst_59 = arith.constant dense<0.000000e+00> : vector<128x128xf32>
    %76 = tpu.matmul %73, %75, %cst_59 {dimension_numbers = #tpu.dot_dimension_numbers<[1], [0], [0], [1], [0, 0, 1, 1], [], []>} : vector<128x128xf32>, vector<128x128xf32>, vector<128x128xf32> -> vector<128x128xf32>
    %c7_60 = arith.constant 7 : index
    %c0_61 = arith.constant 0 : index
    %c0_62 = arith.constant 0 : index
    %77 = vector.load %arg4[%c7_60, %c0_61, %c0_62] : memref<9x1x128xf32, #tpu.memory_space<vmem>>, vector<1x1x128xf32>
    %78 = vector.shape_cast %77 : vector<1x1x128xf32> to vector<1x128xf32>
    %79 = vector.broadcast %78 : vector<1x128xf32> to vector<128x128xf32>
    %80 = arith.addf %76, %79 : vector<128x128xf32>
    %cst_63 = arith.constant 0.000000e+00 : f32
    %81 = vector.broadcast %cst_63 : f32 to vector<128x128xf32>
    %82 = arith.maximumf %80, %81 : vector<128x128xf32>
    %c8 = arith.constant 8 : index
    %c0_64 = arith.constant 0 : index
    %c0_65 = arith.constant 0 : index
    %83 = vector.load %arg3[%c8, %c0_64, %c0_65] : memref<9x128x128xf32, #tpu.memory_space<vmem>>, vector<1x128x128xf32>
    %84 = vector.shape_cast %83 : vector<1x128x128xf32> to vector<128x128xf32>
    %cst_66 = arith.constant dense<0.000000e+00> : vector<128x128xf32>
    %85 = tpu.matmul %82, %84, %cst_66 {dimension_numbers = #tpu.dot_dimension_numbers<[1], [0], [0], [1], [0, 0, 1, 1], [], []>} : vector<128x128xf32>, vector<128x128xf32>, vector<128x128xf32> -> vector<128x128xf32>
    %c8_67 = arith.constant 8 : index
    %c0_68 = arith.constant 0 : index
    %c0_69 = arith.constant 0 : index
    %86 = vector.load %arg4[%c8_67, %c0_68, %c0_69] : memref<9x1x128xf32, #tpu.memory_space<vmem>>, vector<1x1x128xf32>
    %87 = vector.shape_cast %86 : vector<1x1x128xf32> to vector<1x128xf32>
    %88 = vector.broadcast %87 : vector<1x128xf32> to vector<128x128xf32>
    %89 = arith.addf %85, %88 : vector<128x128xf32>
    %c0_70 = arith.constant 0 : index
    %c0_71 = arith.constant 0 : index
    %c0_72 = arith.constant 0 : index
    %90 = vector.load %arg5[%c0_70, %c0_71, %c0_72] : memref<1x128x128xf32, #tpu.memory_space<vmem>>, vector<1x128x128xf32>
    %91 = vector.shape_cast %90 : vector<1x128x128xf32> to vector<128x128xf32>
    %92 = vector.shape_cast %89 : vector<128x128xf32> to vector<1x128x128xf32>
    tpu.vector_store %arg5[%c0_70, %c0_71, %c0_72], %92 {strides = array<i32>} : memref<1x128x128xf32, #tpu.memory_space<vmem>>, vector<1x128x128xf32>,
    return
  }
  func.func @transform_0(%arg0: i32) -> (i32, i32, i32) {
    %c0_i32 = arith.constant 0 : i32
    %c0_i32_0 = arith.constant 0 : i32
    %c0_i32_1 = arith.constant 0 : i32
    return %arg0, %c0_i32, %c0_i32_0 : i32, i32, i32
  }
  func.func @transform_1(%arg0: i32) -> (i32, i32, i32) {
    %c0_i32 = arith.constant 0 : i32
    %c0_i32_0 = arith.constant 0 : i32
    %c0_i32_1 = arith.constant 0 : i32
    return %arg0, %c0_i32, %c0_i32_0 : i32, i32, i32
  }
  func.func @transform_2(%arg0: i32) -> (i32, i32, i32) {
    %c0_i32 = arith.constant 0 : i32
    %c0_i32_0 = arith.constant 0 : i32
    %c0_i32_1 = arith.constant 0 : i32
    %c0_i32_2 = arith.constant 0 : i32
    return %c0_i32, %c0_i32_0, %c0_i32_1 : i32, i32, i32
  }
  func.func @transform_3(%arg0: i32) -> (i32, i32, i32) {
    %c0_i32 = arith.constant 0 : i32
    %c0_i32_0 = arith.constant 0 : i32
    %c0_i32_1 = arith.constant 0 : i32
    %c0_i32_2 = arith.constant 0 : i32
    return %c0_i32, %c0_i32_0, %c0_i32_1 : i32, i32, i32
  }
  func.func @transform_4(%arg0: i32) -> (i32, i32, i32) {
    %c0_i32 = arith.constant 0 : i32
    %c0_i32_0 = arith.constant 0 : i32
    %c0_i32_1 = arith.constant 0 : i32
    return %arg0, %c0_i32, %c0_i32_0 : i32, i32, i32
  }
}

</mosaic_0001>

<bundles_post_ra>
// kernel: gin_forward_fused.1
= control target key start
LH: loop header
LB: loop body
LE: loop exit
PB: predicated region body
PF: predicated region fallthrough
CT: control target
= control target key end

     0   :  { %9 = vsyncpa [#allocation3], 0  ;;  %s1707_s15 = smov 0   ;;  %s2219_s0 = inlined_call_operand.vmem [shape: f32[2,128,16], index: 0, kind: input, shape index: {}]   ;;  %s2220_s1 = inlined_call_operand.vmem [shape: f32[2,128,128], index: 1, kind: input, shape index: {}]   ;;  %s2221_s2 = inlined_call_operand.hbm [shape: f32[9,128,128], index: 2, kind: input, shape index: {}]   ;;  %s2222_s3 = inlined_call_operand.vmem [shape: f32[9,1,128], index: 3, kind: input, shape index: {}]   ;;  %s2223_s4 = inlined_call_operand.vmem [shape: f32[2,128,128], index: 4, kind: output, shape index: {}]  }
   0x1 LB: > { %s151_s18 = sshll.u32 %s2221_s2, 4  ;;  %s1549_s19 = sadd.s32 4294967295, %s1677_s15   ;;  %s1677_s15 = sphi %s1707_s15, %s15_s15   ;;  %s152_s18 = int_to_ptr.hbm [resolvable:$true] %s151_s18 }
   0x2   : > { %p1551_p0 = scmp.ge.s32.totalorder %s1677_s15, 1  ;;  %p140_p1 = scmp.lt.s32.totalorder %s1677_s15, 3 }
   0x3   : > { %p1599_p2 = scmp.eq.s32.totalorder %s1549_s19, 0  ;;  %s1679_s20 = smov [#allocation2]  }
   0x4   : > { %p141_p3 = pnand %p1551_p0, %p140_p1  ;;  %s153_s21 = sshll.u32 %s1679_s20, 4  ;;  %s154_s21 = int_to_ptr.vmem [resolvable:$true] %s153_s21 }
   0x5   : > { %s1680_s22 = smov 128   ;;  %s1681_s23 = smov 8  }
   0x6   : > { %p1595_p4 = pneg %p141_p3  ;;  %188 = sbr.rel (%p141_p3) target bundleno = 2060 (0x80c), region = 36 }
   0x8   : > { %p1596_p5 = pnand %p1599_p2, %p1595_p4 }
   0xa   : > { %1598 = dma.hbm_to_vmem [thread:$0]  (!%p1596_p5), %s152_s18, 18432, %s154_s21, [#allocation3], %s1680_s22, %s1680_s22, %s1681_s23  }
   0xb   : > { %1672 = dma.done.wait (%p1599_p2), [#allocation3], 18432  }
   0xc   : > { %1674 = vsyncadd (%p1599_p2), [#allocation3], 4294948864  ;;  %p220_p6 = scmp.lt.s32.totalorder %s1549_s19, 1  ;;  %v349_v28 = vld [vmem:[#allocation2 + $0x8] sm:$0xff]  ;;  %v348_v30 = vld [vmem:[#allocation2] sm:$0xff]  ;;  %vm354_vm0 = vcmask 130048  }
   0xd   : > { %417 = vmatpush.msra.mxu1 %v349_v28  ;;  %v500_v52 = vld [vmem:[#allocation2 + $0xf8] sm:$0xff]  ;;  %v499_v53 = vld [vmem:[#allocation2 + $0xf0] sm:$0xff]  ;;  %v498_v56 = vld [vmem:[#allocation2 + $0xe8] sm:$0xff] }
   0xe   : > { %s2225_s19 = smov (!%p220_p6, %s1549_s19), 1  ;;  %506 = vmatpush.msra.mxu2 %v500_v52  ;;  %v497_v57 = vld [vmem:[#allocation2 + $0xe0] sm:$0xff]  ;;  %v496_v58 = vld [vmem:[#allocation2 + $0xd8] sm:$0xff]  ;;  %v495_v59 = vld [vmem:[#allocation2 + $0xd0] sm:$0xff] }
   0xf   : > { %s1718_s24 = sshll.u32 %s2225_s19, 7  ;;  %418 = vmatpush.msra.mxu1 %v348_v30  ;;  %v494_v62 = vld [vmem:[#allocation2 + $0xc8] sm:$0xff]  ;;  %v493_v63 = vld [vmem:[#allocation2 + $0xc0] sm:$0xff] }
  0x10   : > { %s1724_s27 = scalar_lea.vmem %s2219_s0, %s1718_s24  ;;  %s1778_s30 = scalar_lea.vmem %s2220_s1, %s1718_s24  ;;  %507 = vmatpush.msra.mxu2 %v499_v53  ;;  %v485_v28 = vld [vmem:[#allocation2 + $0x80] sm:$0xff] }
  0x11   : > { %v1727_v0 = vld [vmem:[%s1724_s27 + $0x78] sm:$0xff]  ;;  %v1730_v1 = vld [vmem:[%s1724_s27 + $0x70] sm:$0xff]  ;;  %v1734_v2 = vld [vmem:[%s1724_s27 + $0x68] sm:$0xff] }
  0x12   : > { %267 = vmatpush.msra.mxu0 %v1727_v0  ;;  %v1738_v3 = vld [vmem:[%s1724_s27 + $0x60] sm:$0xff]  ;;  %v1742_v4 = vld [vmem:[%s1724_s27 + $0x58] sm:$0xff]  ;;  %v1746_v5 = vld [vmem:[%s1724_s27 + $0x50] sm:$0xff]  ;;  %508 = vmatpush.msra.mxu2 %v498_v56 }
  0x13   : > { %v1750_v6 = vld [vmem:[%s1724_s27 + $0x48] sm:$0xff]  ;;  %v1754_v7 = vld [vmem:[%s1724_s27 + $0x40] sm:$0xff]  ;;  %v1758_v8 = vld [vmem:[%s1724_s27 + $0x38] sm:$0xff] }
  0x14   : > { %268 = vmatpush.msra.mxu0 %v1730_v1  ;;  %v1762_v9 = vld [vmem:[%s1724_s27 + $0x30] sm:$0xff]  ;;  %v1766_v10 = vld [vmem:[%s1724_s27 + $0x28] sm:$0xff]  ;;  %v255_v11 = vld [vmem:[%s1724_s27 + $0x20] sm:$0xff]  ;;  %509 = vmatpush.msra.mxu2 %v497_v57 }
  0x15   : > { %v254_v12 = vld [vmem:[%s1724_s27 + $0x18] sm:$0xff]  ;;  %v253_v13 = vld [vmem:[%s1724_s27 + $0x10] sm:$0xff]  ;;  %v252_v14 = vld [vmem:[%s1724_s27 + $0x8] sm:$0xff] }
  0x16   : > { %269 = vmatpush.msra.mxu0 %v1734_v2  ;;  %v251_v15 = vld [vmem:[%s1724_s27] sm:$0xff]  ;;  %v1786_v17 = vld [vmem:[%s1778_s30 + $0x8] sm:$0xff]  ;;  %v1790_v18 = vld [vmem:[%s1778_s30 + $0x10] sm:$0xff]  ;;  %510 = vmatpush.msra.mxu2 %v496_v58  ;;  %s2198_s27 = scalar_lea.vmem %s2223_s4, %s1718_s24 }
  0x17   : > { %v1782_v16 = vld [vmem:[%s1778_s30] sm:$0xff]  ;;  %v1794_v19 = vld [vmem:[%s1778_s30 + $0x18] sm:$0xff]  ;;  %v1802_v21 = vld [vmem:[%s1778_s30 + $0x28] sm:$0xff] }
  0x18   : > { %270 = vmatpush.msra.mxu0 %v1738_v3  ;;  %v1798_v20 = vld [vmem:[%s1778_s30 + $0x20] sm:$0xff]  ;;  %v1806_v22 = vld [vmem:[%s1778_s30 + $0x30] sm:$0xff]  ;;  %v1810_v23 = vld [vmem:[%s1778_s30 + $0x38] sm:$0xff]  ;;  %511 = vmatpush.msra.mxu2 %v495_v59 }
  0x19   : > { %v1814_v24 = vld [vmem:[%s1778_s30 + $0x40] sm:$0xff]  ;;  %v1818_v25 = vld [vmem:[%s1778_s30 + $0x48] sm:$0xff]  ;;  %v1822_v26 = vld [vmem:[%s1778_s30 + $0x50] sm:$0xff] }
  0x1a   : > { %271 = vmatpush.msra.mxu0 %v1742_v4  ;;  %v1826_v27 = vld [vmem:[%s1778_s30 + $0x58] sm:$0xff]  ;;  %v1830_v29 = vld [vmem:[%s1778_s30 + $0x60] sm:$0xff]  ;;  %v1834_v31 = vld [vmem:[%s1778_s30 + $0x68] sm:$0xff]  ;;  %512 = vmatpush.msra.mxu2 %v494_v62 }
  0x1b   : > { %v1838_v32 = vld [vmem:[%s1778_s30 + $0x70] sm:$0xff]  ;;  %v1842_v33 = vld [vmem:[%s1778_s30 + $0x78] sm:$0xff] }
  0x1c   : > { %272 = vmatpush.msra.mxu0 %v1746_v5  ;;  %513 = vmatpush.msra.mxu2 %v493_v63 }
  0x1e   : > { %273 = vmatpush.msra.mxu0 %v1750_v6 }
  0x20   : > { %274 = vmatpush.msra.mxu0 %v1754_v7 }
  0x22   : > { %275 = vmatpush.msra.mxu0 %v1758_v8 }
  0x24   : > { %276 = vmatpush.msra.mxu0 %v1762_v9 }
  0x26   : > { %277 = vmatpush.msra.mxu0 %v1766_v10 }
  0x28   : > { %278 = vmatpush.msra.mxu0 %v255_v11 }
  0x2a   : > { %279 = vmatpush.msra.mxu0 %v254_v12 }
  0x2c   : > { %280 = vmatpush.msra.mxu0 %v253_v13 }
  0x2e   : > { %281 = vmatpush.msra.mxu0 %v252_v14 }
  0x30   : > { %282 = vmatpush.msra.mxu0 %v251_v15 }
  0x31   : > { %283 = vmatmul.f32.vlgmr.msra.gmra.mxu0 %v1782_v16 }
  0x39   : > { %286 = vmatmul.f32.gmra.mxu0 %v1786_v17 }
  0x41   : > { %289 = vmatmul.f32.gmra.mxu0 %v1790_v18 }
  0x49   : > { %292 = vmatmul.f32.gmra.mxu0 %v1794_v19 }
  0x51   : > { %295 = vmatmul.f32.gmra.mxu0 %v1798_v20 }
  0x59   : > { %298 = vmatmul.f32.gmra.mxu0 %v1802_v21 }
  0x61   : > { %301 = vmatmul.f32.gmra.mxu0 %v1806_v22 }
  0x69   : > { %304 = vmatmul.f32.gmra.mxu0 %v1810_v23 }
  0x71   : > { %307 = vmatmul.f32.gmra.mxu0 %v1814_v24 }
  0x79   : > { %310 = vmatmul.f32.gmra.mxu0 %v1818_v25 }
  0x81   : > { %313 = vmatmul.f32.gmra.mxu0 %v1822_v26 }
  0x89   : > { %316 = vmatmul.f32.gmra.mxu0 %v1826_v27 }
  0x91   : > { %319 = vmatmul.f32.gmra.mxu0 %v1830_v29 }
  0x99   : > { %322 = vmatmul.f32.gmra.mxu0 %v1834_v31 }
  0xa1   : > { %325 = vmatmul.f32.gmra.mxu0 %v1838_v32 }
  0xa9   : > { %328 = vmatmul.f32.gmra.mxu0 %v1842_v33 }
  0xae   : > { %v284_v34 = vpop.f32.mrf.mxu0 }
  0xaf   : > { %v332_v35 = vadd.f32 %v284_v34, %v251_v15  ;;  %v486_v15 = vld [vmem:[#allocation2 + $0x88] sm:$0xff] }
  0xb1   : > { %1562 = vmatmul.msk.f32.vlgmr.msra.gmra.mxu1 %vm354_vm0, %v332_v35 }
  0xb6   : > { %v287_v36 = vpop.f32.mrf.mxu0 }
  0xb7   : > { %v333_v37 = vadd.f32 %v287_v36, %v252_v14 }
  0xb9   : > { %1563 = vmatmul.msk.f32.gmra.mxu1 %vm354_vm0, %v333_v37 }
  0xbe   : > { %v290_v38 = vpop.f32.mrf.mxu0 }
  0xbf   : > { %v334_v39 = vadd.f32 %v290_v38, %v253_v13 }
  0xc1   : > { %1564 = vmatmul.msk.f32.gmra.mxu1 %vm354_vm0, %v334_v39 }
  0xc6   : > { %v293_v40 = vpop.f32.mrf.mxu0 }
  0xc7   : > { %v335_v41 = vadd.f32 %v293_v40, %v254_v12  ;;  %v488_v12 = vld [vmem:[#allocation2 + $0x98] sm:$0xff] }
  0xc9   : > { %1565 = vmatmul.msk.f32.gmra.mxu1 %vm354_vm0, %v335_v41 }
  0xce   : > { %v296_v42 = vpop.f32.mrf.mxu0 }
  0xcf   : > { %v336_v43 = vadd.f32 %v296_v42, %v255_v11  ;;  %v489_v11 = vld [vmem:[#allocation2 + $0xa0] sm:$0xff] }
  0xd1   : > { %1566 = vmatmul.msk.f32.gmra.mxu1 %vm354_vm0, %v336_v43 }
  0xd6   : > { %v299_v44 = vpop.f32.mrf.mxu0 }
  0xd7   : > { %v337_v45 = vadd.f32 %v299_v44, %v1766_v10  ;;  %v490_v10 = vld [vmem:[#allocation2 + $0xa8] sm:$0xff] }
  0xd9   : > { %1567 = vmatmul.msk.f32.gmra.mxu1 %vm354_vm0, %v337_v45 }
  0xde   : > { %v302_v46 = vpop.f32.mrf.mxu0 }
  0xdf   : > { %v338_v47 = vadd.f32 %v302_v46, %v1762_v9 }
  0xe1   : > { %1568 = vmatmul.msk.f32.gmra.mxu1 %vm354_vm0, %v338_v47 }
  0xe6   : > { %v305_v48 = vpop.f32.mrf.mxu0 }
  0xe7   : > { %v339_v49 = vadd.f32 %v305_v48, %v1758_v8 }
  0xe9   : > { %1569 = vmatmul.msk.f32.gmra.mxu1 %vm354_vm0, %v339_v49 }
  0xee   : > { %v308_v50 = vpop.f32.mrf.mxu0 }
  0xef   : > { %v340_v51 = vadd.f32 %v308_v50, %v1754_v7  ;;  %v492_v7 = vld [vmem:[#allocation2 + $0xb8] sm:$0xff] }
  0xf0   : > { %514 = vmatpush.msra.mxu2 %v492_v7 }
  0xf1   : > { %1570 = vmatmul.msk.f32.gmra.mxu1 %vm354_vm0, %v340_v51 }
  0xf6   : > { %v311_v54 = vpop.f32.mrf.mxu0 }
  0xf7   : > { %v341_v55 = vadd.f32 %v311_v54, %v1750_v6  ;;  %v491_v6 = vld [vmem:[#allocation2 + $0xb0] sm:$0xff] }
  0xf8   : > { %515 = vmatpush.msra.mxu2 %v491_v6  ;;  %v603_v6 = vld [vmem:[#allocation2 + $0x178] sm:$0xff] }
  0xf9   : > { %1571 = vmatmul.msk.f32.gmra.mxu1 %vm354_vm0, %v341_v55  ;;  %609 = vmatpush.msra.mxu3 %v603_v6 }
  0xfa   : > { %516 = vmatpush.msra.mxu2 %v490_v10 }
  0xfc   : > { %517 = vmatpush.msra.mxu2 %v489_v11  ;;  %v601_v11 = vld [vmem:[#allocation2 + $0x168] sm:$0xff] }
  0xfe   : > { %v314_v60 = vpop.f32.mrf.mxu0  ;;  %518 = vmatpush.msra.mxu2 %v488_v12  ;;  %v600_v12 = vld [vmem:[#allocation2 + $0x160] sm:$0xff] }
  0xff   : > { %v342_v61 = vadd.f32 %v314_v60, %v1746_v5  ;;  %v487_v5 = vld [vmem:[#allocation2 + $0x90] sm:$0xff] }
 0x100   : > { %519 = vmatpush.msra.mxu2 %v487_v5 }
 0x101   : > { %1572 = vmatmul.msk.f32.gmra.mxu1 %vm354_vm0, %v342_v61 }
 0x102   : > { %520 = vmatpush.msra.mxu2 %v486_v15 }
 0x104   : > { %521 = vmatpush.msra.mxu2 %v485_v28 }
 0x106   : > { %v317_v8 = vpop.f32.mrf.mxu0 }
 0x107   : > { %v343_v9 = vadd.f32 %v317_v8, %v1742_v4  ;;  %v602_v8 = vld [vmem:[#allocation2 + $0x170] sm:$0xff] }
 0x108   : > { %610 = vmatpush.msra.mxu3 %v602_v8 }
 0x109   : > { %1573 = vmatmul.msk.f32.gmra.mxu1 %vm354_vm0, %v343_v9 }
 0x10a   : > { %611 = vmatpush.msra.mxu3 %v601_v11 }
 0x10c   : > { %612 = vmatpush.msra.mxu3 %v600_v12 }
 0x10e   : > { %v320_v13 = vpop.f32.mrf.mxu0 }
 0x10f   : > { %v344_v14 = vadd.f32 %v320_v13, %v1738_v3  ;;  %v1875_v3 = vld [vmem:[%s2222_s3] ss:$0 sm:$0xff]  ;;  %v599_v13 = vld [vmem:[#allocation2 + $0x158] sm:$0xff] }
 0x110   : > { %613 = vmatpush.msra.mxu3 %v599_v13 }
 0x111   : > { %1574 = vmatmul.msk.f32.gmra.mxu1 %vm354_vm0, %v344_v14  ;;  %v598_v14 = vld [vmem:[#allocation2 + $0x150] sm:$0xff] }
 0x112   : > { %614 = vmatpush.msra.mxu3 %v598_v14 }
 0x116   : > { %v323_v4 = vpop.f32.mrf.mxu0 }
 0x117   : > { %v345_v30 = vadd.f32 %v323_v4, %v1734_v2  ;;  %v597_v4 = vld [vmem:[#allocation2 + $0x148] sm:$0xff] }
 0x118   : > { %615 = vmatpush.msra.mxu3 %v597_v4 }
 0x119   : > { %1575 = vmatmul.msk.f32.gmra.mxu1 %vm354_vm0, %v345_v30  ;;  %v596_v30 = vld [vmem:[#allocation2 + $0x140] sm:$0xff] }
 0x11a   : > { %616 = vmatpush.msra.mxu3 %v596_v30 }
 0x11e   : > { %v326_v34 = vpop.f32.mrf.mxu0 }
 0x11f   : > { %v346_v35 = vadd.f32 %v326_v34, %v1730_v1 }
 0x121   : > { %1576 = vmatmul.msk.f32.gmra.mxu1 %vm354_vm0, %v346_v35  ;;  %v595_v35 = vld [vmem:[#allocation2 + $0x138] sm:$0xff] }
 0x122   : > { %617 = vmatpush.msra.mxu3 %v595_v35 }
 0x126   : > { %v329_v36 = vpop.f32.mrf.mxu0 }
 0x127   : > { %v347_v37 = vadd.f32 %v329_v36, %v1727_v0  ;;  %v594_v36 = vld [vmem:[#allocation2 + $0x130] sm:$0xff] }
 0x128   : > { %618 = vmatpush.msra.mxu3 %v594_v36 }
 0x129   : > { %1577 = vmatmul.msk.f32.gmra.mxu1 %vm354_vm0, %v347_v37  ;;  %v593_v37 = vld [vmem:[#allocation2 + $0x128] sm:$0xff] }
 0x12a   : > { %619 = vmatpush.msra.mxu3 %v593_v37 }
 0x12e   : > { %v420_v38 = vpop.f32.mrf.mxu1 }
 0x12f   : > { %v421_v2 = vadd.f32 %v1875_v3, %v420_v38 }
 0x131   : > { %v468_v39 = vmax.f32 %v421_v2, 0.0 }
 0x133   : > { %522 = vmatmul.f32.vlgmr.msra.gmra.mxu2 %v468_v39  ;;  %v592_v39 = vld [vmem:[#allocation2 + $0x120] sm:$0xff] }
 0x134   : > { %620 = vmatpush.msra.mxu3 %v592_v39 }
 0x136   : > { %v423_v40 = vpop.f32.mrf.mxu1 }
 0x137   : > { %v424_v1 = vadd.f32 %v1875_v3, %v423_v40 }
 0x139   : > { %v469_v41 = vmax.f32 %v424_v1, 0.0  ;;  %v591_v1 = vld [vmem:[#allocation2 + $0x118] sm:$0xff] }
 0x13a   : > { %621 = vmatpush.msra.mxu3 %v591_v1 }
 0x13b   : > { %525 = vmatmul.f32.gmra.mxu2 %v469_v41  ;;  %v590_v41 = vld [vmem:[#allocation2 + $0x110] sm:$0xff] }
 0x13c   : > { %622 = vmatpush.msra.mxu3 %v590_v41 }
 0x13e   : > { %v426_v42 = vpop.f32.mrf.mxu1 }
 0x13f   : > { %v427_v0 = vadd.f32 %v1875_v3, %v426_v42 }
 0x141   : > { %v470_v43 = vmax.f32 %v427_v0, 0.0 }
 0x143   : > { %528 = vmatmul.f32.gmra.mxu2 %v470_v43  ;;  %v589_v43 = vld [vmem:[#allocation2 + $0x108] sm:$0xff] }
 0x144   : > { %623 = vmatpush.msra.mxu3 %v589_v43 }
 0x146   : > { %v429_v44 = vpop.f32.mrf.mxu1 }
 0x147   : > { %v430_v45 = vadd.f32 %v1875_v3, %v429_v44  ;;  %v588_v44 = vld [vmem:[#allocation2 + $0x100] sm:$0xff] }
 0x148   : > { %624 = vmatpush.msra.mxu3 %v588_v44 }
 0x149   : > { %v471_v46 = vmax.f32 %v430_v45, 0.0 }
 0x14b   : > { %531 = vmatmul.f32.gmra.mxu2 %v471_v46 }
 0x14e   : > { %v432_v47 = vpop.f32.mrf.mxu1 }
 0x14f   : > { %v433_v48 = vadd.f32 %v1875_v3, %v432_v47 }
 0x151   : > { %v472_v49 = vmax.f32 %v433_v48, 0.0 }
 0x153   : > { %534 = vmatmul.f32.gmra.mxu2 %v472_v49 }
 0x156   : > { %v435_v50 = vpop.f32.mrf.mxu1 }
 0x157   : > { %v436_v51 = vadd.f32 %v1875_v3, %v435_v50 }
 0x159   : > { %v473_v52 = vmax.f32 %v436_v51, 0.0 }
 0x15b   : > { %537 = vmatmul.f32.gmra.mxu2 %v473_v52  ;;  %v1613_v52 = vld [vmem:[%s2222_s3 + $0x1] ss:$0 sm:$0xff] }
 0x15e   : > { %v438_v53 = vpop.f32.mrf.mxu1 }
 0x15f   : > { %v439_v54 = vadd.f32 %v1875_v3, %v438_v53 }
 0x161   : > { %v474_v55 = vmax.f32 %v439_v54, 0.0 }
 0x163   : > { %540 = vmatmul.f32.gmra.mxu2 %v474_v55 }
 0x166   : > { %v441_v56 = vpop.f32.mrf.mxu1 }
 0x167   : > { %v442_v57 = vadd.f32 %v1875_v3, %v441_v56 }
 0x169   : > { %v475_v58 = vmax.f32 %v442_v57, 0.0 }
 0x16b   : > { %543 = vmatmul.f32.gmra.mxu2 %v475_v58 }
 0x16e   : > { %v444_v59 = vpop.f32.mrf.mxu1 }
 0x16f   : > { %v445_v60 = vadd.f32 %v1875_v3, %v444_v59 }
 0x171   : > { %v476_v61 = vmax.f32 %v445_v60, 0.0 }
 0x173   : > { %546 = vmatmul.f32.gmra.mxu2 %v476_v61 }
 0x176   : > { %v447_v62 = vpop.f32.mrf.mxu1 }
 0x177   : > { %v448_v63 = vadd.f32 %v1875_v3, %v447_v62 }
 0x179   : > { %v477_v7 = vmax.f32 %v448_v63, 0.0 }
 0x17b   : > { %549 = vmatmul.f32.gmra.mxu2 %v477_v7 }
 0x17e   : > { %v450_v9 = vpop.f32.mrf.mxu1 }
 0x17f   : > { %v451_v10 = vadd.f32 %v1875_v3, %v450_v9 }
 0x181   : > { %v478_v5 = vmax.f32 %v451_v10, 0.0 }
 0x183   : > { %552 = vmatmul.f32.gmra.mxu2 %v478_v5 }
 0x186   : > { %v453_v15 = vpop.f32.mrf.mxu1 }
 0x187   : > { %v454_v28 = vadd.f32 %v1875_v3, %v453_v15 }
 0x189   : > { %v479_v34 = vmax.f32 %v454_v28, 0.0 }
 0x18b   : > { %555 = vmatmul.f32.gmra.mxu2 %v479_v34 }
 0x18e   : > { %v456_v38 = vpop.f32.mrf.mxu1 }
 0x18f   : > { %v457_v2 = vadd.f32 %v1875_v3, %v456_v38 }
 0x191   : > { %v480_v40 = vmax.f32 %v457_v2, 0.0 }
 0x193   : > { %558 = vmatmul.f32.gmra.mxu2 %v480_v40 }
 0x196   : > { %v459_v42 = vpop.f32.mrf.mxu1 }
 0x197   : > { %v460_v0 = vadd.f32 %v1875_v3, %v459_v42 }
 0x199   : > { %v481_v45 = vmax.f32 %v460_v0, 0.0 }
 0x19b   : > { %561 = vmatmul.f32.gmra.mxu2 %v481_v45 }
 0x19e   : > { %v462_v46 = vpop.f32.mrf.mxu1 }
 0x19f   : > { %v463_v47 = vadd.f32 %v1875_v3, %v462_v46 }
 0x1a1   : > { %v482_v48 = vmax.f32 %v463_v47, 0.0 }
 0x1a3   : > { %564 = vmatmul.f32.gmra.mxu2 %v482_v48 }
 0x1a6   : > { %v465_v49 = vpop.f32.mrf.mxu1 }
 0x1a7   : > { %v466_v50 = vadd.f32 %v1875_v3, %v465_v49 }
 0x1a9   : > { %v483_v51 = vmax.f32 %v466_v50, 0.0 }
 0x1ab   : > { %567 = vmatmul.f32.gmra.mxu2 %v483_v51 }
 0x1b6   : > { %v523_v53 = vpop.f32.mrf.mxu2 }
 0x1b7   : > { %v524_v54 = vadd.f32 %v1613_v52, %v523_v53 }
 0x1b9   : > { %v571_v55 = vmax.f32 %v524_v54, 0.0 }
 0x1bb   : > { %625 = vmatmul.f32.vlgmr.msra.gmra.mxu3 %v571_v55 }
 0x1be   : > { %v526_v56 = vpop.f32.mrf.mxu2 }
 0x1bf   : > { %v527_v57 = vadd.f32 %v1613_v52, %v526_v56 }
 0x1c1   : > { %v572_v58 = vmax.f32 %v527_v57, 0.0 }
 0x1c3   : > { %628 = vmatmul.f32.gmra.mxu3 %v572_v58 }
 0x1c6   : > { %v529_v59 = vpop.f32.mrf.mxu2 }
 0x1c7   : > { %v530_v60 = vadd.f32 %v1613_v52, %v529_v59 }
 0x1c9   : > { %v573_v61 = vmax.f32 %v530_v60, 0.0 }
 0x1cb   : > { %631 = vmatmul.f32.gmra.mxu3 %v573_v61 }
 0x1ce   : > { %v532_v62 = vpop.f32.mrf.mxu2 }
 0x1cf   : > { %v533_v3 = vadd.f32 %v1613_v52, %v532_v62 }
 0x1d1   : > { %v574_v63 = vmax.f32 %v533_v3, 0.0 }
 0x1d3   : > { %634 = vmatmul.f32.gmra.mxu3 %v574_v63 }
 0x1d6   : > { %v535_v7 = vpop.f32.mrf.mxu2 }
 0x1d7   : > { %v536_v6 = vadd.f32 %v1613_v52, %v535_v7 }
 0x1d9   : > { %v575_v8 = vmax.f32 %v536_v6, 0.0 }
 0x1db   : > { %637 = vmatmul.f32.gmra.mxu3 %v575_v8 }
 0x1de   : > { %v538_v9 = vpop.f32.mrf.mxu2 }
 0x1df   : > { %v539_v10 = vadd.f32 %v1613_v52, %v538_v9 }
 0x1e1   : > { %v576_v11 = vmax.f32 %v539_v10, 0.0 }
 0x1e3   : > { %640 = vmatmul.f32.gmra.mxu3 %v576_v11 }
 0x1e6   : > { %v541_v12 = vpop.f32.mrf.mxu2 }
 0x1e7   : > { %v542_v5 = vadd.f32 %v1613_v52, %v541_v12 }
 0x1e9   : > { %v577_v13 = vmax.f32 %v542_v5, 0.0 }
 0x1eb   : > { %643 = vmatmul.f32.gmra.mxu3 %v577_v13 }
 0x1ee   : > { %v544_v14 = vpop.f32.mrf.mxu2 }
 0x1ef   : > { %v545_v15 = vadd.f32 %v1613_v52, %v544_v14 }
 0x1f1   : > { %v578_v28 = vmax.f32 %v545_v15, 0.0 }
 0x1f3   : > { %646 = vmatmul.f32.gmra.mxu3 %v578_v28 }
 0x1f6   : > { %v547_v4 = vpop.f32.mrf.mxu2 }
 0x1f7   : > { %v548_v30 = vadd.f32 %v1613_v52, %v547_v4 }
 0x1f9   : > { %v579_v34 = vmax.f32 %v548_v30, 0.0 }
 0x1fb   : > { %649 = vmatmul.f32.gmra.mxu3 %v579_v34 }
 0x1fe   : > { %v550_v35 = vpop.f32.mrf.mxu2 }
 0x1ff   : > { %v551_v36 = vadd.f32 %v1613_v52, %v550_v35 }
 0x201   : > { %v580_v37 = vmax.f32 %v551_v36, 0.0 }
 0x203   : > { %652 = vmatmul.f32.gmra.mxu3 %v580_v37 }
 0x206   : > { %v553_v38 = vpop.f32.mrf.mxu2 }
 0x207   : > { %v554_v2 = vadd.f32 %v1613_v52, %v553_v38 }
 0x209   : > { %v581_v39 = vmax.f32 %v554_v2, 0.0 }
 0x20b   : > { %655 = vmatmul.f32.gmra.mxu3 %v581_v39 }
 0x20e   : > { %v556_v40 = vpop.f32.mrf.mxu2 }
 0x20f   : > { %v557_v1 = vadd.f32 %v1613_v52, %v556_v40 }
 0x211   : > { %v582_v41 = vmax.f32 %v557_v1, 0.0 }
 0x213   : > { %658 = vmatmul.f32.gmra.mxu3 %v582_v41 }
 0x216   : > { %v559_v42 = vpop.f32.mrf.mxu2 }
 0x217   : > { %v560_v0 = vadd.f32 %v1613_v52, %v559_v42 }
 0x219   : > { %v583_v43 = vmax.f32 %v560_v0, 0.0 }
 0x21b   : > { %661 = vmatmul.f32.gmra.mxu3 %v583_v43 }
 0x21e   : > { %v562_v44 = vpop.f32.mrf.mxu2 }
 0x21f   : > { %v563_v45 = vadd.f32 %v1613_v52, %v562_v44 }
 0x221   : > { %v584_v46 = vmax.f32 %v563_v45, 0.0 }
 0x223   : > { %664 = vmatmul.f32.gmra.mxu3 %v584_v46 }
 0x226   : > { %v565_v47 = vpop.f32.mrf.mxu2 }
 0x227   : > { %v566_v48 = vadd.f32 %v1613_v52, %v565_v47 }
 0x229   : > { %v585_v49 = vmax.f32 %v566_v48, 0.0 }
 0x22b   : > { %667 = vmatmul.f32.gmra.mxu3 %v585_v49 }
 0x22e   : > { %v568_v50 = vpop.f32.mrf.mxu2 }
 0x22f   : > { %v569_v51 = vadd.f32 %v1613_v52, %v568_v50  ;;  %v1614_v52 = vld [vmem:[%s2222_s3 + $0x2] ss:$0 sm:$0xff] }
 0x231   : > { %v586_v53 = vmax.f32 %v569_v51, 0.0 }
 0x233   : > { %670 = vmatmul.f32.gmra.mxu3 %v586_v53 }
 0x23e   : > { %v626_v54 = vpop.f32.mrf.mxu3 }
 0x23f   : > { %v627_v50 = vadd.f32 %v1614_v52, %v626_v54  ;;  %v787_v54 = vld [vmem:[#allocation2 + $0x1f8] sm:$0xff] }
 0x240   : > { %793 = vmatpush.msrb.mxu0 %v787_v54  ;;  %v878_v54 = vld [vmem:[#allocation2 + $0x218] sm:$0xff] }
 0x246   : > { %v629_v55 = vpop.f32.mrf.mxu3 }
 0x247   : > { %v1961_v48 = vadd.f32 %v1614_v52, %v629_v55  ;;  %v786_v55 = vld [vmem:[#allocation2 + $0x1f0] sm:$0xff] }
 0x248   : > { %794 = vmatpush.msrb.mxu0 %v786_v55 }
 0x249   : > { %v675_v53 = vmax.f32 %v1961_v48, 0.0 }
 0x24e   : > { %v632_v56 = vpop.f32.mrf.mxu3 }
 0x24f   : > { %v1956_v46 = vadd.f32 %v1614_v52, %v632_v56  ;;  %v674_v56 = vmax.f32 %v627_v50, 0.0  ;;  %v882_v50 = vld [vmem:[#allocation2 + $0x238] sm:$0xff] }
 0x251   : > { %v676_v51 = vmax.f32 %v1956_v46, 0.0  ;;  %v890_v46 = vld [vmem:[#allocation2 + $0x278] sm:$0xff] }
 0x252   : > { %896 = vmatpush.msrb.mxu2 %v890_v46 }
 0x256   : > { %v635_v57 = vpop.f32.mrf.mxu3 }
 0x257   : > { %v1951_v44 = vadd.f32 %v1614_v52, %v635_v57  ;;  %v776_v57 = vld [vmem:[#allocation2 + $0x1a0] sm:$0xff] }
 0x259   : > { %v677_v49 = vmax.f32 %v1951_v44, 0.0 }
 0x25e   : > { %v638_v58 = vpop.f32.mrf.mxu3 }
 0x25f   : > { %v1946_v0 = vadd.f32 %v1614_v52, %v638_v58  ;;  %v774_v58 = vld [vmem:[#allocation2 + $0x190] sm:$0xff] }
 0x261   : > { %v678_v47 = vmax.f32 %v1946_v0, 0.0 }
 0x266   : > { %v641_v59 = vpop.f32.mrf.mxu3 }
 0x267   : > { %v1941_v41 = vadd.f32 %v1614_v52, %v641_v59  ;;  %v773_v59 = vld [vmem:[#allocation2 + $0x188] sm:$0xff] }
 0x269   : > { %v679_v45 = vmax.f32 %v1941_v41, 0.0  ;;  %v889_v41 = vld [vmem:[#allocation2 + $0x270] sm:$0xff] }
 0x26a   : > { %897 = vmatpush.msrb.mxu2 %v889_v41  ;;  %v991_v41 = vld [vmem:[#allocation2 + $0x2e8] sm:$0xff] }
 0x26e   : > { %v644_v60 = vpop.f32.mrf.mxu3 }
 0x26f   : > { %v1936_v40 = vadd.f32 %v1614_v52, %v644_v60  ;;  %v772_v60 = vld [vmem:[#allocation2 + $0x180] sm:$0xff] }
 0x271   : > { %v680_v43 = vmax.f32 %v1936_v40, 0.0 }
 0x276   : > { %v647_v61 = vpop.f32.mrf.mxu3 }
 0x277   : > { %v1931_v2 = vadd.f32 %v1614_v52, %v647_v61 }
 0x279   : > { %v681_v42 = vmax.f32 %v1931_v2, 0.0  ;;  %v886_v2 = vld [vmem:[#allocation2 + $0x258] sm:$0xff] }
 0x27e   : > { %v650_v62 = vpop.f32.mrf.mxu3 }
 0x27f   : > { %v1926_v37 = vadd.f32 %v1614_v52, %v650_v62 }
 0x281   : > { %v682_v1 = vmax.f32 %v1926_v37, 0.0 }
 0x286   : > { %v653_v3 = vpop.f32.mrf.mxu3 }
 0x287   : > { %v1921_v35 = vadd.f32 %v1614_v52, %v653_v3 }
 0x289   : > { %v683_v39 = vmax.f32 %v1921_v35, 0.0  ;;  %v881_v35 = vld [vmem:[#allocation2 + $0x230] sm:$0xff] }
 0x28e   : > { %v656_v63 = vpop.f32.mrf.mxu3 }
 0x28f   : > { %v1916_v30 = vadd.f32 %v1614_v52, %v656_v63 }
 0x291   : > { %v684_v38 = vmax.f32 %v1916_v30, 0.0  ;;  %v877_v30 = vld [vmem:[#allocation2 + $0x210] sm:$0xff] }
 0x296   : > { %v659_v7 = vpop.f32.mrf.mxu3 }
 0x297   : > { %v1911_v28 = vadd.f32 %v1614_v52, %v659_v7 }
 0x299   : > { %v685_v36 = vmax.f32 %v1911_v28, 0.0 }
 0x29e   : > { %v662_v6 = vpop.f32.mrf.mxu3 }
 0x29f   : > { %v1906_v14 = vadd.f32 %v1614_v52, %v662_v6 }
 0x2a1   : > { %v686_v34 = vmax.f32 %v1906_v14, 0.0 }
 0x2a6   : > { %v665_v8 = vpop.f32.mrf.mxu3 }
 0x2a7   : > { %v1903_v5 = vadd.f32 %v1614_v52, %v665_v8 }
 0x2a9   : > { %v687_v4 = vmax.f32 %v1903_v5, 0.0 }
 0x2ae   : > { %v668_v9 = vpop.f32.mrf.mxu3 }
 0x2af   : > { %v1899_v11 = vadd.f32 %v1614_v52, %v668_v9 }
 0x2b1   : > { %v688_v15 = vmax.f32 %v1899_v11, 0.0 }
 0x2b6   : > { %v671_v10 = vpop.f32.mrf.mxu3 }
 0x2b7   : > { %v1901_v12 = vadd.f32 %v1614_v52, %v671_v10 }
 0x2b9   : > { %v689_v13 = vmax.f32 %v1901_v12, 0.0 }
 0x2bb   : > { %690 = vmatpush.msrb.mxu1 %v689_v13 }
 0x2bd   : > { %691 = vmatpush.msrb.mxu1 %v688_v15 }
 0x2bf   : > { %692 = vmatpush.msrb.mxu1 %v687_v4 }
 0x2c1   : > { %693 = vmatpush.msrb.mxu1 %v686_v34 }
 0x2c3   : > { %694 = vmatpush.msrb.mxu1 %v685_v36 }
 0x2c5   : > { %695 = vmatpush.msrb.mxu1 %v684_v38 }
 0x2c7   : > { %696 = vmatpush.msrb.mxu1 %v683_v39 }
 0x2c9   : > { %697 = vmatpush.msrb.mxu1 %v682_v1 }
 0x2cb   : > { %698 = vmatpush.msrb.mxu1 %v681_v42 }
 0x2cd   : > { %699 = vmatpush.msrb.mxu1 %v680_v43 }
 0x2cf   : > { %700 = vmatpush.msrb.mxu1 %v679_v45 }
 0x2d1   : > { %701 = vmatpush.msrb.mxu1 %v678_v47 }
 0x2d3   : > { %702 = vmatpush.msrb.mxu1 %v677_v49 }
 0x2d5   : > { %703 = vmatpush.msrb.mxu1 %v676_v51 }
 0x2d7   : > { %704 = vmatpush.msrb.mxu1 %v675_v53 }
 0x2d9   : > { %705 = vmatpush.msrb.mxu1 %v674_v56 }
 0x2da   : > { %706 = vmatmul.f32.vlgmr.msrb.gmra.mxu1 %v1782_v16  ;;  %v785_v16 = vld [vmem:[#allocation2 + $0x1e8] sm:$0xff] }
 0x2db   : > { %795 = vmatpush.msrb.mxu0 %v785_v16  ;;  %v876_v16 = vld [vmem:[#allocation2 + $0x208] sm:$0xff] }
 0x2e2   : > { %709 = vmatmul.f32.gmra.mxu1 %v1786_v17  ;;  %v784_v17 = vld [vmem:[#allocation2 + $0x1e0] sm:$0xff] }
 0x2e3   : > { %796 = vmatpush.msrb.mxu0 %v784_v17  ;;  %v875_v17 = vld [vmem:[#allocation2 + $0x200] sm:$0xff] }
 0x2ea   : > { %712 = vmatmul.f32.gmra.mxu1 %v1790_v18  ;;  %v783_v18 = vld [vmem:[#allocation2 + $0x1d8] sm:$0xff] }
 0x2eb   : > { %797 = vmatpush.msrb.mxu0 %v783_v18 }
 0x2f2   : > { %715 = vmatmul.f32.gmra.mxu1 %v1794_v19  ;;  %v782_v19 = vld [vmem:[#allocation2 + $0x1d0] sm:$0xff] }
 0x2f3   : > { %798 = vmatpush.msrb.mxu0 %v782_v19 }
 0x2fa   : > { %718 = vmatmul.f32.gmra.mxu1 %v1798_v20  ;;  %v781_v20 = vld [vmem:[#allocation2 + $0x1c8] sm:$0xff] }
 0x2fb   : > { %799 = vmatpush.msrb.mxu0 %v781_v20 }
 0x302   : > { %721 = vmatmul.f32.gmra.mxu1 %v1802_v21  ;;  %v780_v21 = vld [vmem:[#allocation2 + $0x1c0] sm:$0xff] }
 0x303   : > { %800 = vmatpush.msrb.mxu0 %v780_v21 }
 0x30a   : > { %724 = vmatmul.f32.gmra.mxu1 %v1806_v22  ;;  %v779_v22 = vld [vmem:[#allocation2 + $0x1b8] sm:$0xff] }
 0x30b   : > { %801 = vmatpush.msrb.mxu0 %v779_v22 }
 0x312   : > { %727 = vmatmul.f32.gmra.mxu1 %v1810_v23  ;;  %v778_v23 = vld [vmem:[#allocation2 + $0x1b0] sm:$0xff] }
 0x313   : > { %802 = vmatpush.msrb.mxu0 %v778_v23 }
 0x31a   : > { %730 = vmatmul.f32.gmra.mxu1 %v1814_v24  ;;  %v777_v24 = vld [vmem:[#allocation2 + $0x1a8] sm:$0xff] }
 0x31b   : > { %803 = vmatpush.msrb.mxu0 %v777_v24 }
 0x31d   : > { %804 = vmatpush.msrb.mxu0 %v776_v57 }
 0x322   : > { %733 = vmatmul.f32.gmra.mxu1 %v1818_v25  ;;  %v775_v25 = vld [vmem:[#allocation2 + $0x198] sm:$0xff] }
 0x323   : > { %805 = vmatpush.msrb.mxu0 %v775_v25 }
 0x325   : > { %806 = vmatpush.msrb.mxu0 %v774_v58 }
 0x327   : > { %807 = vmatpush.msrb.mxu0 %v773_v59 }
 0x329   : > { %808 = vmatpush.msrb.mxu0 %v772_v60 }
 0x32a   : > { %736 = vmatmul.f32.gmra.mxu1 %v1822_v26 }
 0x332   : > { %739 = vmatmul.f32.gmra.mxu1 %v1826_v27 }
 0x33a   : > { %742 = vmatmul.f32.gmra.mxu1 %v1830_v29 }
 0x342   : > { %745 = vmatmul.f32.gmra.mxu1 %v1834_v31 }
 0x34a   : > { %748 = vmatmul.f32.gmra.mxu1 %v1838_v32 }
 0x352   : > { %751 = vmatmul.f32.gmra.mxu1 %v1842_v33 }
 0x357   : > { %v707_v26 = vpop.f32.mrf.mxu1 }
 0x358   : > { %v755_v61 = vadd.f32 %v707_v26, %v674_v56  ;;  %v879_v56 = vld [vmem:[#allocation2 + $0x220] sm:$0xff] }
 0x35a   : > { %809 = vmatmul.f32.vlgmr.msrb.gmra.mxu0 %v755_v61 }
 0x35f   : > { %v710_v27 = vpop.f32.mrf.mxu1 }
 0x360   : > { %v756_v62 = vadd.f32 %v710_v27, %v675_v53  ;;  %v880_v53 = vld [vmem:[#allocation2 + $0x228] sm:$0xff] }
 0x362   : > { %812 = vmatmul.f32.gmra.mxu0 %v756_v62 }
 0x367   : > { %v713_v3 = vpop.f32.mrf.mxu1 }
 0x368   : > { %v757_v63 = vadd.f32 %v713_v3, %v676_v51 }
 0x36a   : > { %815 = vmatmul.f32.gmra.mxu0 %v757_v63 }
 0x36f   : > { %v716_v7 = vpop.f32.mrf.mxu1 }
 0x370   : > { %v758_v6 = vadd.f32 %v716_v7, %v677_v49  ;;  %v883_v49 = vld [vmem:[#allocation2 + $0x240] sm:$0xff] }
 0x372   : > { %818 = vmatmul.f32.gmra.mxu0 %v758_v6 }
 0x377   : > { %v719_v29 = vpop.f32.mrf.mxu1 }
 0x378   : > { %v759_v31 = vadd.f32 %v719_v29, %v678_v47  ;;  %v887_v47 = vld [vmem:[#allocation2 + $0x260] sm:$0xff] }
 0x37a   : > { %821 = vmatmul.f32.gmra.mxu0 %v759_v31 }
 0x37f   : > { %v722_v32 = vpop.f32.mrf.mxu1 }
 0x380   : > { %v760_v33 = vadd.f32 %v722_v32, %v679_v45 }
 0x382   : > { %824 = vmatmul.f32.gmra.mxu0 %v760_v33 }
 0x387   : > { %v725_v8 = vpop.f32.mrf.mxu1 }
 0x388   : > { %v761_v9 = vadd.f32 %v725_v8, %v680_v43  ;;  %v888_v43 = vld [vmem:[#allocation2 + $0x268] sm:$0xff] }
 0x389   : > { %898 = vmatpush.msrb.mxu2 %v888_v43  ;;  %v989_v43 = vld [vmem:[#allocation2 + $0x2d8] sm:$0xff] }
 0x38a   : > { %827 = vmatmul.f32.gmra.mxu0 %v761_v9 }
 0x38b   : > { %899 = vmatpush.msrb.mxu2 %v887_v47  ;;  %v988_v47 = vld [vmem:[#allocation2 + $0x2d0] sm:$0xff] }
 0x38d   : > { %900 = vmatpush.msrb.mxu2 %v886_v2 }
 0x38f   : > { %v728_v52 = vpop.f32.mrf.mxu1 }
 0x390   : > { %v762_v10 = vadd.f32 %v728_v52, %v681_v42  ;;  %v885_v42 = vld [vmem:[#allocation2 + $0x250] sm:$0xff] }
 0x391   : > { %901 = vmatpush.msrb.mxu2 %v885_v42 }
 0x392   : > { %830 = vmatmul.f32.gmra.mxu0 %v762_v10  ;;  %v993_v10 = vld [vmem:[#allocation2 + $0x2f8] sm:$0xff] }
 0x393   : > { %999 = vmatpush.msrb.mxu3 %v993_v10 }
 0x397   : > { %v731_v44 = vpop.f32.mrf.mxu1 }
 0x398   : > { %v763_v0 = vadd.f32 %v731_v44, %v682_v1  ;;  %v884_v1 = vld [vmem:[#allocation2 + $0x248] sm:$0xff]  ;;  %v992_v44 = vld [vmem:[#allocation2 + $0x2f0] sm:$0xff] }
 0x399   : > { %902 = vmatpush.msrb.mxu2 %v884_v1  ;;  %1000 = vmatpush.msrb.mxu3 %v992_v44  ;;  %v986_v1 = vld [vmem:[#allocation2 + $0x2c0] sm:$0xff] }
 0x39a   : > { %833 = vmatmul.f32.gmra.mxu0 %v763_v0 }
 0x39b   : > { %903 = vmatpush.msrb.mxu2 %v883_v49  ;;  %1001 = vmatpush.msrb.mxu3 %v991_v41  ;;  %v985_v49 = vld [vmem:[#allocation2 + $0x2b8] sm:$0xff] }
 0x39d   : > { %904 = vmatpush.msrb.mxu2 %v882_v50  ;;  %v984_v50 = vld [vmem:[#allocation2 + $0x2b0] sm:$0xff] }
 0x39f   : > { %v734_v45 = vpop.f32.mrf.mxu1  ;;  %905 = vmatpush.msrb.mxu2 %v881_v35  ;;  %v983_v35 = vld [vmem:[#allocation2 + $0x2a8] sm:$0xff] }
 0x3a0   : > { %v764_v40 = vadd.f32 %v734_v45, %v683_v39 }
 0x3a1   : > { %906 = vmatpush.msrb.mxu2 %v880_v53  ;;  %v982_v53 = vld [vmem:[#allocation2 + $0x2a0] sm:$0xff] }
 0x3a2   : > { %836 = vmatmul.f32.gmra.mxu0 %v764_v40  ;;  %v990_v40 = vld [vmem:[#allocation2 + $0x2e0] sm:$0xff] }
 0x3a3   : > { %907 = vmatpush.msrb.mxu2 %v879_v56  ;;  %1002 = vmatpush.msrb.mxu3 %v990_v40 }
 0x3a5   : > { %908 = vmatpush.msrb.mxu2 %v878_v54  ;;  %1003 = vmatpush.msrb.mxu3 %v989_v43  ;;  %v981_v54 = vld [vmem:[#allocation2 + $0x298] sm:$0xff] }
 0x3a7   : > { %v737_v48 = vpop.f32.mrf.mxu1  ;;  %909 = vmatpush.msrb.mxu2 %v877_v30  ;;  %1004 = vmatpush.msrb.mxu3 %v988_v47  ;;  %v980_v30 = vld [vmem:[#allocation2 + $0x290] sm:$0xff] }
 0x3a8   : > { %v765_v37 = vadd.f32 %v737_v48, %v684_v38  ;;  %v987_v48 = vld [vmem:[#allocation2 + $0x2c8] sm:$0xff] }
 0x3a9   : > { %910 = vmatpush.msrb.mxu2 %v876_v16  ;;  %1005 = vmatpush.msrb.mxu3 %v987_v48  ;;  %v979_v16 = vld [vmem:[#allocation2 + $0x288] sm:$0xff] }
 0x3aa   : > { %839 = vmatmul.f32.gmra.mxu0 %v765_v37 }
 0x3ab   : > { %911 = vmatpush.msrb.mxu2 %v875_v17  ;;  %1006 = vmatpush.msrb.mxu3 %v986_v1 }
 0x3ad   : > { %1007 = vmatpush.msrb.mxu3 %v985_v49 }
 0x3af   : > { %v740_v39 = vpop.f32.mrf.mxu1  ;;  %1008 = vmatpush.msrb.mxu3 %v984_v50 }
 0x3b0   : > { %v766_v51 = vadd.f32 %v740_v39, %v685_v36 }
 0x3b1   : > { %1009 = vmatpush.msrb.mxu3 %v983_v35 }
 0x3b2   : > { %842 = vmatmul.f32.gmra.mxu0 %v766_v51 }
 0x3b3   : > { %1010 = vmatpush.msrb.mxu3 %v982_v53 }
 0x3b5   : > { %1011 = vmatpush.msrb.mxu3 %v981_v54 }
 0x3b7   : > { %v743_v38 = vpop.f32.mrf.mxu1  ;;  %1012 = vmatpush.msrb.mxu3 %v980_v30 }
 0x3b8   : > { %v767_v55 = vadd.f32 %v743_v38, %v686_v34  ;;  %v2015_v34 = vld [vmem:[%s2222_s3 + $0x3] ss:$0 sm:$0xff] }
 0x3b9   : > { %1013 = vmatpush.msrb.mxu3 %v979_v16 }
 0x3ba   : > { %845 = vmatmul.f32.gmra.mxu0 %v767_v55 }
 0x3bf   : > { %v746_v28 = vpop.f32.mrf.mxu1 }
 0x3c0   : > { %v768_v36 = vadd.f32 %v746_v28, %v687_v4  ;;  %v978_v28 = vld [vmem:[#allocation2 + $0x280] sm:$0xff] }
 0x3c1   : > { %1014 = vmatpush.msrb.mxu3 %v978_v28 }
 0x3c2   : > { %848 = vmatmul.f32.gmra.mxu0 %v768_v36 }
 0x3c7   : > { %v749_v18 = vpop.f32.mrf.mxu1 }
 0x3c8   : > { %v769_v19 = vadd.f32 %v749_v18, %v688_v15 }
 0x3ca   : > { %851 = vmatmul.f32.gmra.mxu0 %v769_v19 }
 0x3cf   : > { %v752_v20 = vpop.f32.mrf.mxu1 }
 0x3d0   : > { %v770_v14 = vadd.f32 %v752_v20, %v689_v13 }
 0x3d2   : > { %854 = vmatmul.f32.gmra.mxu0 %v770_v14 }
 0x3d7   : > { %v810_v21 = vpop.f32.mrf.mxu0 }
 0x3d8   : > { %v811_v5 = vadd.f32 %v2015_v34, %v810_v21 }
 0x3da   : > { %v858_v4 = vmax.f32 %v811_v5, 0.0  ;;  %v1616_v5 = vld [vmem:[%s2222_s3 + $0x4] ss:$0 sm:$0xff] }
 0x3dc   : > { %912 = vmatmul.f32.vlgmr.msrb.gmra.mxu2 %v858_v4 }
 0x3df   : > { %v813_v22 = vpop.f32.mrf.mxu0 }
 0x3e0   : > { %v814_v11 = vadd.f32 %v2015_v34, %v813_v22 }
 0x3e2   : > { %v859_v15 = vmax.f32 %v814_v11, 0.0 }
 0x3e4   : > { %915 = vmatmul.f32.gmra.mxu2 %v859_v15 }
 0x3e7   : > { %v816_v23 = vpop.f32.mrf.mxu0 }
 0x3e8   : > { %v817_v12 = vadd.f32 %v2015_v34, %v816_v23 }
 0x3ea   : > { %v860_v13 = vmax.f32 %v817_v12, 0.0 }
 0x3ec   : > { %918 = vmatmul.f32.gmra.mxu2 %v860_v13 }
 0x3ef   : > { %v819_v24 = vpop.f32.mrf.mxu0 }
 0x3f0   : > { %v820_v57 = vadd.f32 %v2015_v34, %v819_v24 }
 0x3f2   : > { %v861_v25 = vmax.f32 %v820_v57, 0.0 }
 0x3f4   : > { %921 = vmatmul.f32.gmra.mxu2 %v861_v25 }
 0x3f7   : > { %v822_v58 = vpop.f32.mrf.mxu0 }
 0x3f8   : > { %v823_v59 = vadd.f32 %v2015_v34, %v822_v58 }
 0x3fa   : > { %v862_v60 = vmax.f32 %v823_v59, 0.0 }
 0x3fc   : > { %924 = vmatmul.f32.gmra.mxu2 %v862_v60 }
 0x3ff   : > { %v825_v26 = vpop.f32.mrf.mxu0 }
 0x400   : > { %v826_v61 = vadd.f32 %v2015_v34, %v825_v26 }
 0x402   : > { %v863_v27 = vmax.f32 %v826_v61, 0.0 }
 0x404   : > { %927 = vmatmul.f32.gmra.mxu2 %v863_v27 }
 0x407   : > { %v828_v62 = vpop.f32.mrf.mxu0 }
 0x408   : > { %v829_v3 = vadd.f32 %v2015_v34, %v828_v62 }
 0x40a   : > { %v864_v63 = vmax.f32 %v829_v3, 0.0 }
 0x40c   : > { %930 = vmatmul.f32.gmra.mxu2 %v864_v63 }
 0x40f   : > { %v831_v7 = vpop.f32.mrf.mxu0 }
 0x410   : > { %v832_v6 = vadd.f32 %v2015_v34, %v831_v7 }
 0x412   : > { %v865_v29 = vmax.f32 %v832_v6, 0.0 }
 0x414   : > { %933 = vmatmul.f32.gmra.mxu2 %v865_v29 }
 0x417   : > { %v834_v31 = vpop.f32.mrf.mxu0 }
 0x418   : > { %v835_v32 = vadd.f32 %v2015_v34, %v834_v31 }
 0x41a   : > { %v866_v33 = vmax.f32 %v835_v32, 0.0 }
 0x41c   : > { %936 = vmatmul.f32.gmra.mxu2 %v866_v33 }
 0x41f   : > { %v837_v8 = vpop.f32.mrf.mxu0 }
 0x420   : > { %v838_v9 = vadd.f32 %v2015_v34, %v837_v8 }
 0x422   : > { %v867_v52 = vmax.f32 %v838_v9, 0.0 }
 0x424   : > { %939 = vmatmul.f32.gmra.mxu2 %v867_v52 }
 0x427   : > { %v840_v0 = vpop.f32.mrf.mxu0 }
 0x428   : > { %v841_v46 = vadd.f32 %v2015_v34, %v840_v0 }
 0x42a   : > { %v868_v45 = vmax.f32 %v841_v46, 0.0 }
 0x42c   : > { %942 = vmatmul.f32.gmra.mxu2 %v868_v45 }
 0x42f   : > { %v843_v2 = vpop.f32.mrf.mxu0 }
 0x430   : > { %v844_v42 = vadd.f32 %v2015_v34, %v843_v2 }
 0x432   : > { %v869_v37 = vmax.f32 %v844_v42, 0.0 }
 0x434   : > { %945 = vmatmul.f32.gmra.mxu2 %v869_v37 }
 0x437   : > { %v846_v39 = vpop.f32.mrf.mxu0 }
 0x438   : > { %v847_v51 = vadd.f32 %v2015_v34, %v846_v39 }
 0x43a   : > { %v870_v56 = vmax.f32 %v847_v51, 0.0 }
 0x43c   : > { %948 = vmatmul.f32.gmra.mxu2 %v870_v56 }
 0x43f   : > { %v849_v38 = vpop.f32.mrf.mxu0 }
 0x440   : > { %v850_v55 = vadd.f32 %v2015_v34, %v849_v38 }
 0x442   : > { %v871_v17 = vmax.f32 %v850_v55, 0.0 }
 0x444   : > { %951 = vmatmul.f32.gmra.mxu2 %v871_v17 }
 0x447   : > { %v852_v36 = vpop.f32.mrf.mxu0 }
 0x448   : > { %v853_v18 = vadd.f32 %v2015_v34, %v852_v36 }
 0x44a   : > { %v872_v19 = vmax.f32 %v853_v18, 0.0 }
 0x44c   : > { %954 = vmatmul.f32.gmra.mxu2 %v872_v19 }
 0x44f   : > { %v855_v20 = vpop.f32.mrf.mxu0 }
 0x450   : > { %v856_v14 = vadd.f32 %v2015_v34, %v855_v20 }
 0x452   : > { %v873_v21 = vmax.f32 %v856_v14, 0.0 }
 0x454   : > { %957 = vmatmul.f32.gmra.mxu2 %v873_v21 }
 0x45f   : > { %v913_v4 = vpop.f32.mrf.mxu2 }
 0x460   : > { %v914_v22 = vadd.f32 %v1616_v5, %v913_v4 }
 0x462   : > { %v961_v11 = vmax.f32 %v914_v22, 0.0 }
 0x464   : > { %1015 = vmatmul.f32.vlgmr.msrb.gmra.mxu3 %v961_v11 }
 0x467   : > { %v916_v15 = vpop.f32.mrf.mxu2 }
 0x468   : > { %v917_v23 = vadd.f32 %v1616_v5, %v916_v15 }
 0x46a   : > { %v962_v12 = vmax.f32 %v917_v23, 0.0 }
 0x46c   : > { %1018 = vmatmul.f32.gmra.mxu3 %v962_v12 }
 0x46f   : > { %v919_v13 = vpop.f32.mrf.mxu2 }
 0x470   : > { %v920_v24 = vadd.f32 %v1616_v5, %v919_v13 }
 0x472   : > { %v963_v57 = vmax.f32 %v920_v24, 0.0 }
 0x474   : > { %1021 = vmatmul.f32.gmra.mxu3 %v963_v57 }
 0x477   : > { %v922_v25 = vpop.f32.mrf.mxu2 }
 0x478   : > { %v923_v34 = vadd.f32 %v1616_v5, %v922_v25 }
 0x47a   : > { %v964_v58 = vmax.f32 %v923_v34, 0.0 }
 0x47c   : > { %1024 = vmatmul.f32.gmra.mxu3 %v964_v58 }
 0x47f   : > { %v925_v59 = vpop.f32.mrf.mxu2 }
 0x480   : > { %v926_v60 = vadd.f32 %v1616_v5, %v925_v59 }
 0x482   : > { %v965_v26 = vmax.f32 %v926_v60, 0.0 }
 0x484   : > { %1027 = vmatmul.f32.gmra.mxu3 %v965_v26 }
 0x487   : > { %v928_v61 = vpop.f32.mrf.mxu2 }
 0x488   : > { %v929_v27 = vadd.f32 %v1616_v5, %v928_v61 }
 0x48a   : > { %v966_v62 = vmax.f32 %v929_v27, 0.0 }
 0x48c   : > { %1030 = vmatmul.f32.gmra.mxu3 %v966_v62 }
 0x48f   : > { %v931_v3 = vpop.f32.mrf.mxu2 }
 0x490   : > { %v932_v63 = vadd.f32 %v1616_v5, %v931_v3 }
 0x492   : > { %v967_v7 = vmax.f32 %v932_v63, 0.0 }
 0x494   : > { %1033 = vmatmul.f32.gmra.mxu3 %v967_v7 }
 0x497   : > { %v934_v6 = vpop.f32.mrf.mxu2 }
 0x498   : > { %v935_v29 = vadd.f32 %v1616_v5, %v934_v6 }
 0x49a   : > { %v968_v31 = vmax.f32 %v935_v29, 0.0 }
 0x49c   : > { %1036 = vmatmul.f32.gmra.mxu3 %v968_v31 }
 0x49f   : > { %v937_v32 = vpop.f32.mrf.mxu2 }
 0x4a0   : > { %v938_v33 = vadd.f32 %v1616_v5, %v937_v32 }
 0x4a2   : > { %v969_v8 = vmax.f32 %v938_v33, 0.0 }
 0x4a4   : > { %1039 = vmatmul.f32.gmra.mxu3 %v969_v8 }
 0x4a7   : > { %v940_v9 = vpop.f32.mrf.mxu2 }
 0x4a8   : > { %v941_v52 = vadd.f32 %v1616_v5, %v940_v9 }
 0x4aa   : > { %v970_v10 = vmax.f32 %v941_v52, 0.0 }
 0x4ac   : > { %1042 = vmatmul.f32.gmra.mxu3 %v970_v10 }
 0x4af   : > { %v943_v44 = vpop.f32.mrf.mxu2 }
 0x4b0   : > { %v944_v0 = vadd.f32 %v1616_v5, %v943_v44 }
 0x4b2   : > { %v971_v46 = vmax.f32 %v944_v0, 0.0 }
 0x4b4   : > { %1045 = vmatmul.f32.gmra.mxu3 %v971_v46 }
 0x4b7   : > { %v946_v41 = vpop.f32.mrf.mxu2 }
 0x4b8   : > { %v947_v45 = vadd.f32 %v1616_v5, %v946_v41  ;;  %v1621_v41 = vld [vmem:[%s1778_s30] sm:$0xff] }
 0x4ba   : > { %v972_v40 = vmax.f32 %v947_v45, 0.0  ;;  %v1622_v45 = vld [vmem:[%s1778_s30 + $0x8] sm:$0xff] }
 0x4bc   : > { %1048 = vmatmul.f32.gmra.mxu3 %v972_v40  ;;  %v1623_v40 = vld [vmem:[%s1778_s30 + $0x10] sm:$0xff] }
 0x4bf   : > { %v949_v43 = vpop.f32.mrf.mxu2 }
 0x4c0   : > { %v950_v47 = vadd.f32 %v1616_v5, %v949_v43  ;;  %v1624_v43 = vld [vmem:[%s1778_s30 + $0x18] sm:$0xff] }
 0x4c2   : > { %v973_v2 = vmax.f32 %v950_v47, 0.0  ;;  %v1625_v47 = vld [vmem:[%s1778_s30 + $0x20] sm:$0xff] }
 0x4c4   : > { %1051 = vmatmul.f32.gmra.mxu3 %v973_v2  ;;  %v1626_v2 = vld [vmem:[%s1778_s30 + $0x28] sm:$0xff] }
 0x4c7   : > { %v952_v42 = vpop.f32.mrf.mxu2 }
 0x4c8   : > { %v953_v48 = vadd.f32 %v1616_v5, %v952_v42  ;;  %v1627_v42 = vld [vmem:[%s1778_s30 + $0x30] sm:$0xff] }
 0x4ca   : > { %v974_v37 = vmax.f32 %v953_v48, 0.0  ;;  %v1628_v48 = vld [vmem:[%s1778_s30 + $0x38] sm:$0xff] }
 0x4cc   : > { %1054 = vmatmul.f32.gmra.mxu3 %v974_v37  ;;  %v1629_v37 = vld [vmem:[%s1778_s30 + $0x40] sm:$0xff] }
 0x4cf   : > { %v955_v1 = vpop.f32.mrf.mxu2 }
 0x4d0   : > { %v956_v49 = vadd.f32 %v1616_v5, %v955_v1  ;;  %v1177_v1 = vld [vmem:[#allocation2 + $0x378] sm:$0xff] }
 0x4d1   : > { %1183 = vmatpush.msra.mxu0 %v1177_v1  ;;  %v1277_v1 = vld [vmem:[#allocation2 + $0x3e0] sm:$0xff] }
 0x4d2   : > { %v975_v50 = vmax.f32 %v956_v49, 0.0  ;;  %v1176_v49 = vld [vmem:[#allocation2 + $0x370] sm:$0xff] }
 0x4d3   : > { %1184 = vmatpush.msra.mxu0 %v1176_v49 }
 0x4d4   : > { %1057 = vmatmul.f32.gmra.mxu3 %v975_v50  ;;  %v1175_v50 = vld [vmem:[#allocation2 + $0x368] sm:$0xff] }
 0x4d5   : > { %1185 = vmatpush.msra.mxu0 %v1175_v50  ;;  %v1273_v50 = vld [vmem:[#allocation2 + $0x3c0] sm:$0xff] }
 0x4d7   : > { %v958_v35 = vpop.f32.mrf.mxu2 }
 0x4d8   : > { %v959_v39 = vadd.f32 %v1616_v5, %v958_v35  ;;  %v1617_v5 = vld [vmem:[%s2222_s3 + $0x5] ss:$0 sm:$0xff] }
 0x4d9   : > { %v1174_v35 = vld [vmem:[#allocation2 + $0x360] sm:$0xff] }
 0x4da   : > { %v976_v51 = vmax.f32 %v959_v39, 0.0  ;;  %1186 = vmatpush.msra.mxu0 %v1174_v35  ;;  %v1630_v39 = vld [vmem:[%s1778_s30 + $0x48] sm:$0xff]  ;;  %v1272_v35 = vld [vmem:[#allocation2 + $0x3b8] sm:$0xff] }
 0x4dc   : > { %1060 = vmatmul.f32.gmra.mxu3 %v976_v51  ;;  %v1173_v51 = vld [vmem:[#allocation2 + $0x358] sm:$0xff] }
 0x4dd   : > { %1187 = vmatpush.msra.mxu0 %v1173_v51  ;;  %v1270_v51 = vld [vmem:[#allocation2 + $0x3a8] sm:$0xff] }
 0x4e7   : > { %v1016_v53 = vpop.f32.mrf.mxu3 }
 0x4e8   : > { %v2106_v10 = vadd.f32 %v1617_v5, %v1016_v53  ;;  %v1172_v53 = vld [vmem:[#allocation2 + $0x350] sm:$0xff] }
 0x4e9   : > { %1188 = vmatpush.msra.mxu0 %v1172_v53  ;;  %v1269_v53 = vld [vmem:[#allocation2 + $0x3a0] sm:$0xff] }
 0x4ea   : > { %v1064_v46 = vmax.f32 %v2106_v10, 0.0 }
 0x4ef   : > { %v1019_v56 = vpop.f32.mrf.mxu3 }
 0x4f0   : > { %v2101_v9 = vadd.f32 %v1617_v5, %v1019_v56  ;;  %v1171_v56 = vld [vmem:[#allocation2 + $0x348] sm:$0xff] }
 0x4f1   : > { %1189 = vmatpush.msra.mxu0 %v1171_v56  ;;  %v1268_v56 = vld [vmem:[#allocation2 + $0x398] sm:$0xff] }
 0x4f2   : > { %v1065_v0 = vmax.f32 %v2101_v9, 0.0 }
 0x4f7   : > { %v1022_v54 = vpop.f32.mrf.mxu3 }
 0x4f8   : > { %v2096_v33 = vadd.f32 %v1617_v5, %v1022_v54  ;;  %v1170_v54 = vld [vmem:[#allocation2 + $0x340] sm:$0xff] }
 0x4f9   : > { %1190 = vmatpush.msra.mxu0 %v1170_v54 }
 0x4fa   : > { %v1066_v44 = vmax.f32 %v2096_v33, 0.0 }
 0x4ff   : > { %v1025_v30 = vpop.f32.mrf.mxu3 }
 0x500   : > { %v2091_v31 = vadd.f32 %v1617_v5, %v1025_v30  ;;  %v1631_v30 = vld [vmem:[%s1778_s30 + $0x50] sm:$0xff] }
 0x502   : > { %v1067_v52 = vmax.f32 %v2091_v31, 0.0 }
 0x507   : > { %v1028_v38 = vpop.f32.mrf.mxu3 }
 0x508   : > { %v2086_v6 = vadd.f32 %v1617_v5, %v1028_v38  ;;  %v1169_v38 = vld [vmem:[#allocation2 + $0x338] sm:$0xff] }
 0x509   : > { %1191 = vmatpush.msra.mxu0 %v1169_v38  ;;  %v1265_v38 = vld [vmem:[#allocation2 + $0x380] sm:$0xff] }
 0x50a   : > { %v1068_v8 = vmax.f32 %v2086_v6, 0.0 }
 0x50f   : > { %v1031_v55 = vpop.f32.mrf.mxu3 }
 0x510   : > { %v2081_v63 = vadd.f32 %v1617_v5, %v1031_v55  ;;  %v1168_v55 = vld [vmem:[#allocation2 + $0x330] sm:$0xff] }
 0x511   : > { %1192 = vmatpush.msra.mxu0 %v1168_v55 }
 0x512   : > { %v1069_v32 = vmax.f32 %v2081_v63, 0.0  ;;  %v1279_v63 = vld [vmem:[#allocation2 + $0x3f0] sm:$0xff] }
 0x517   : > { %v1034_v16 = vpop.f32.mrf.mxu3 }
 0x518   : > { %v2076_v62 = vadd.f32 %v1617_v5, %v1034_v16  ;;  %v1167_v16 = vld [vmem:[#allocation2 + $0x328] sm:$0xff] }
 0x519   : > { %1193 = vmatpush.msra.mxu0 %v1167_v16 }
 0x51a   : > { %v1070_v29 = vmax.f32 %v2076_v62, 0.0 }
 0x51f   : > { %v1037_v17 = vpop.f32.mrf.mxu3 }
 0x520   : > { %v2071_v61 = vadd.f32 %v1617_v5, %v1037_v17  ;;  %v1166_v17 = vld [vmem:[#allocation2 + $0x320] sm:$0xff] }
 0x521   : > { %1194 = vmatpush.msra.mxu0 %v1166_v17 }
 0x522   : > { %v1071_v7 = vmax.f32 %v2071_v61, 0.0  ;;  %v1276_v61 = vld [vmem:[#allocation2 + $0x3d8] sm:$0xff] }
 0x527   : > { %v1040_v28 = vpop.f32.mrf.mxu3 }
 0x528   : > { %v2066_v60 = vadd.f32 %v1617_v5, %v1040_v28  ;;  %v1632_v28 = vld [vmem:[%s1778_s30 + $0x58] sm:$0xff] }
 0x52a   : > { %v1072_v3 = vmax.f32 %v2066_v60, 0.0 }
 0x52f   : > { %v1043_v36 = vpop.f32.mrf.mxu3 }
 0x530   : > { %v2061_v58 = vadd.f32 %v1617_v5, %v1043_v36  ;;  %v1165_v36 = vld [vmem:[#allocation2 + $0x318] sm:$0xff] }
 0x531   : > { %1195 = vmatpush.msra.mxu0 %v1165_v36 }
 0x532   : > { %v1073_v27 = vmax.f32 %v2061_v58, 0.0  ;;  %v1271_v58 = vld [vmem:[#allocation2 + $0x3b0] sm:$0xff] }
 0x537   : > { %v1046_v18 = vpop.f32.mrf.mxu3 }
 0x538   : > { %v2056_v25 = vadd.f32 %v1617_v5, %v1046_v18  ;;  %v1164_v18 = vld [vmem:[#allocation2 + $0x310] sm:$0xff] }
 0x539   : > { %1196 = vmatpush.msra.mxu0 %v1164_v18 }
 0x53a   : > { %v1074_v26 = vmax.f32 %v2056_v25, 0.0  ;;  %v1267_v25 = vld [vmem:[#allocation2 + $0x390] sm:$0xff] }
 0x53f   : > { %v1049_v19 = vpop.f32.mrf.mxu3 }
 0x540   : > { %v2051_v24 = vadd.f32 %v1617_v5, %v1049_v19  ;;  %v1163_v19 = vld [vmem:[#allocation2 + $0x308] sm:$0xff] }
 0x541   : > { %1197 = vmatpush.msra.mxu0 %v1163_v19 }
 0x542   : > { %v1075_v59 = vmax.f32 %v2051_v24, 0.0 }
 0x547   : > { %v1052_v20 = vpop.f32.mrf.mxu3 }
 0x548   : > { %v2046_v12 = vadd.f32 %v1617_v5, %v1052_v20  ;;  %v1162_v20 = vld [vmem:[#allocation2 + $0x300] sm:$0xff] }
 0x549   : > { %1198 = vmatpush.msra.mxu0 %v1162_v20 }
 0x54a   : > { %v1076_v34 = vmax.f32 %v2046_v12, 0.0 }
 0x54f   : > { %v1055_v14 = vpop.f32.mrf.mxu3 }
 0x550   : > { %v2043_v15 = vadd.f32 %v1617_v5, %v1055_v14  ;;  %v1633_v14 = vld [vmem:[%s1778_s30 + $0x60] sm:$0xff] }
 0x552   : > { %v1077_v57 = vmax.f32 %v2043_v15, 0.0 }
 0x557   : > { %v1058_v21 = vpop.f32.mrf.mxu3 }
 0x558   : > { %v2039_v22 = vadd.f32 %v1617_v5, %v1058_v21  ;;  %v1634_v21 = vld [vmem:[%s1778_s30 + $0x68] sm:$0xff] }
 0x55a   : > { %v1078_v13 = vmax.f32 %v2039_v22, 0.0 }
 0x55f   : > { %v1061_v4 = vpop.f32.mrf.mxu3 }
 0x560   : > { %v2041_v11 = vadd.f32 %v1617_v5, %v1061_v4  ;;  %v1635_v5 = vld [vmem:[%s1778_s30 + $0x70] sm:$0xff]  ;;  %v1636_v4 = vld [vmem:[%s1778_s30 + $0x78] sm:$0xff] }
 0x562   : > { %v1079_v23 = vmax.f32 %v2041_v11, 0.0 }
 0x564   : > { %1080 = vmatpush.msra.mxu1 %v1079_v23 }
 0x566   : > { %1081 = vmatpush.msra.mxu1 %v1078_v13 }
 0x568   : > { %1082 = vmatpush.msra.mxu1 %v1077_v57 }
 0x56a   : > { %1083 = vmatpush.msra.mxu1 %v1076_v34 }
 0x56c   : > { %1084 = vmatpush.msra.mxu1 %v1075_v59 }
 0x56e   : > { %1085 = vmatpush.msra.mxu1 %v1074_v26 }
 0x570   : > { %1086 = vmatpush.msra.mxu1 %v1073_v27 }
 0x572   : > { %1087 = vmatpush.msra.mxu1 %v1072_v3 }
 0x574   : > { %1088 = vmatpush.msra.mxu1 %v1071_v7 }
 0x576   : > { %1089 = vmatpush.msra.mxu1 %v1070_v29 }
 0x578   : > { %1090 = vmatpush.msra.mxu1 %v1069_v32 }
 0x57a   : > { %1091 = vmatpush.msra.mxu1 %v1068_v8 }
 0x57c   : > { %1092 = vmatpush.msra.mxu1 %v1067_v52 }
 0x57e   : > { %1093 = vmatpush.msra.mxu1 %v1066_v44 }
 0x580   : > { %1094 = vmatpush.msra.mxu1 %v1065_v0 }
 0x582   : > { %1095 = vmatpush.msra.mxu1 %v1064_v46 }
 0x583   : > { %1096 = vmatmul.f32.vlgmr.msra.gmra.mxu1 %v1621_v41 }
 0x58b   : > { %1099 = vmatmul.f32.gmra.mxu1 %v1622_v45 }
 0x593   : > { %1102 = vmatmul.f32.gmra.mxu1 %v1623_v40 }
 0x59b   : > { %1105 = vmatmul.f32.gmra.mxu1 %v1624_v43 }
 0x5a3   : > { %1108 = vmatmul.f32.gmra.mxu1 %v1625_v47 }
 0x5ab   : > { %1111 = vmatmul.f32.gmra.mxu1 %v1626_v2 }
 0x5b3   : > { %1114 = vmatmul.f32.gmra.mxu1 %v1627_v42 }
 0x5bb   : > { %1117 = vmatmul.f32.gmra.mxu1 %v1628_v48 }
 0x5c3   : > { %1120 = vmatmul.f32.gmra.mxu1 %v1629_v37 }
 0x5cb   : > { %1123 = vmatmul.f32.gmra.mxu1 %v1630_v39 }
 0x5d3   : > { %1126 = vmatmul.f32.gmra.mxu1 %v1631_v30  ;;  %v1266_v30 = vld [vmem:[#allocation2 + $0x388] sm:$0xff] }
 0x5db   : > { %1129 = vmatmul.f32.gmra.mxu1 %v1632_v28 }
 0x5e3   : > { %1132 = vmatmul.f32.gmra.mxu1 %v1633_v14 }
 0x5eb   : > { %1135 = vmatmul.f32.gmra.mxu1 %v1634_v21 }
 0x5f3   : > { %1138 = vmatmul.f32.gmra.mxu1 %v1635_v5 }
 0x5fb   : > { %1141 = vmatmul.f32.gmra.mxu1 %v1636_v4 }
 0x600   : > { %v1097_v41 = vpop.f32.mrf.mxu1 }
 0x601   : > { %v1145_v45 = vadd.f32 %v1097_v41, %v1064_v46 }
 0x603   : > { %1199 = vmatmul.f32.vlgmr.msra.gmra.mxu0 %v1145_v45 }
 0x608   : > { %v1100_v40 = vpop.f32.mrf.mxu1 }
 0x609   : > { %v1146_v43 = vadd.f32 %v1100_v40, %v1065_v0 }
 0x60b   : > { %1202 = vmatmul.f32.gmra.mxu0 %v1146_v43 }
 0x610   : > { %v1103_v47 = vpop.f32.mrf.mxu1 }
 0x611   : > { %v1147_v2 = vadd.f32 %v1103_v47, %v1066_v44 }
 0x613   : > { %1205 = vmatmul.f32.gmra.mxu0 %v1147_v2 }
 0x618   : > { %v1106_v42 = vpop.f32.mrf.mxu1 }
 0x619   : > { %v1148_v48 = vadd.f32 %v1106_v42, %v1067_v52 }
 0x61b   : > { %1208 = vmatmul.f32.gmra.mxu0 %v1148_v48 }
 0x620   : > { %v1109_v37 = vpop.f32.mrf.mxu1 }
 0x621   : > { %v1149_v10 = vadd.f32 %v1109_v37, %v1068_v8  ;;  %v1280_v8 = vld [vmem:[#allocation2 + $0x3f8] sm:$0xff] }
 0x622   : > { %1286 = vmatpush.msra.mxu2 %v1280_v8 }
 0x623   : > { %1211 = vmatmul.f32.gmra.mxu0 %v1149_v10 }
 0x624   : > { %1287 = vmatpush.msra.mxu2 %v1279_v63  ;;  %v1381_v63 = vld [vmem:[#allocation2 + $0x468] sm:$0xff] }
 0x628   : > { %v1112_v46 = vpop.f32.mrf.mxu1 }
 0x629   : > { %v1150_v9 = vadd.f32 %v1112_v46, %v1069_v32 }
 0x62b   : > { %1214 = vmatmul.f32.gmra.mxu0 %v1150_v9 }
 0x630   : > { %v1115_v0 = vpop.f32.mrf.mxu1 }
 0x631   : > { %v1151_v33 = vadd.f32 %v1115_v0, %v1070_v29  ;;  %v1278_v29 = vld [vmem:[#allocation2 + $0x3e8] sm:$0xff] }
 0x632   : > { %1288 = vmatpush.msra.mxu2 %v1278_v29  ;;  %v1379_v29 = vld [vmem:[#allocation2 + $0x458] sm:$0xff] }
 0x633   : > { %1217 = vmatmul.f32.gmra.mxu0 %v1151_v33 }
 0x634   : > { %1289 = vmatpush.msra.mxu2 %v1277_v1  ;;  %v1378_v1 = vld [vmem:[#allocation2 + $0x450] sm:$0xff] }
 0x636   : > { %1290 = vmatpush.msra.mxu2 %v1276_v61 }
 0x638   : > { %v1118_v44 = vpop.f32.mrf.mxu1 }
 0x639   : > { %v1152_v31 = vadd.f32 %v1118_v44, %v1071_v7  ;;  %v1275_v7 = vld [vmem:[#allocation2 + $0x3d0] sm:$0xff] }
 0x63a   : > { %1291 = vmatpush.msra.mxu2 %v1275_v7 }
 0x63b   : > { %1220 = vmatmul.f32.gmra.mxu0 %v1152_v31  ;;  %v1383_v31 = vld [vmem:[#allocation2 + $0x478] sm:$0xff] }
 0x63c   : > { %1389 = vmatpush.msra.mxu3 %v1383_v31 }
 0x640   : > { %v1121_v52 = vpop.f32.mrf.mxu1 }
 0x641   : > { %v1153_v6 = vadd.f32 %v1121_v52, %v1072_v3  ;;  %v1274_v3 = vld [vmem:[#allocation2 + $0x3c8] sm:$0xff]  ;;  %v1382_v52 = vld [vmem:[#allocation2 + $0x470] sm:$0xff] }
 0x642   : > { %1292 = vmatpush.msra.mxu2 %v1274_v3  ;;  %1390 = vmatpush.msra.mxu3 %v1382_v52  ;;  %v1376_v3 = vld [vmem:[#allocation2 + $0x440] sm:$0xff] }
 0x643   : > { %1223 = vmatmul.f32.gmra.mxu0 %v1153_v6 }
 0x644   : > { %1293 = vmatpush.msra.mxu2 %v1273_v50  ;;  %1391 = vmatpush.msra.mxu3 %v1381_v63  ;;  %v1375_v50 = vld [vmem:[#allocation2 + $0x438] sm:$0xff] }
 0x646   : > { %1294 = vmatpush.msra.mxu2 %v1272_v35  ;;  %v1374_v35 = vld [vmem:[#allocation2 + $0x430] sm:$0xff] }
 0x648   : > { %v1124_v32 = vpop.f32.mrf.mxu1  ;;  %1295 = vmatpush.msra.mxu2 %v1271_v58  ;;  %v1373_v58 = vld [vmem:[#allocation2 + $0x428] sm:$0xff] }
 0x649   : > { %v1154_v62 = vadd.f32 %v1124_v32, %v1073_v27 }
 0x64a   : > { %1296 = vmatpush.msra.mxu2 %v1270_v51  ;;  %v1372_v51 = vld [vmem:[#allocation2 + $0x420] sm:$0xff] }
 0x64b   : > { %1226 = vmatmul.f32.gmra.mxu0 %v1154_v62  ;;  %v1380_v62 = vld [vmem:[#allocation2 + $0x460] sm:$0xff] }
 0x64c   : > { %1297 = vmatpush.msra.mxu2 %v1269_v53  ;;  %1392 = vmatpush.msra.mxu3 %v1380_v62 }
 0x64e   : > { %1298 = vmatpush.msra.mxu2 %v1268_v56  ;;  %1393 = vmatpush.msra.mxu3 %v1379_v29  ;;  %v1371_v56 = vld [vmem:[#allocation2 + $0x418] sm:$0xff] }
 0x650   : > { %v1127_v49 = vpop.f32.mrf.mxu1  ;;  %1299 = vmatpush.msra.mxu2 %v1267_v25  ;;  %1394 = vmatpush.msra.mxu3 %v1378_v1  ;;  %v1370_v25 = vld [vmem:[#allocation2 + $0x410] sm:$0xff] }
 0x651   : > { %v1155_v60 = vadd.f32 %v1127_v49, %v1074_v26  ;;  %v1377_v49 = vld [vmem:[#allocation2 + $0x448] sm:$0xff] }
 0x652   : > { %1300 = vmatpush.msra.mxu2 %v1266_v30  ;;  %1395 = vmatpush.msra.mxu3 %v1377_v49  ;;  %v1369_v30 = vld [vmem:[#allocation2 + $0x408] sm:$0xff] }
 0x653   : > { %1229 = vmatmul.f32.gmra.mxu0 %v1155_v60 }
 0x654   : > { %1301 = vmatpush.msra.mxu2 %v1265_v38  ;;  %1396 = vmatpush.msra.mxu3 %v1376_v3 }
 0x656   : > { %1397 = vmatpush.msra.mxu3 %v1375_v50 }
 0x658   : > { %v1130_v27 = vpop.f32.mrf.mxu1  ;;  %1398 = vmatpush.msra.mxu3 %v1374_v35 }
 0x659   : > { %v1156_v39 = vadd.f32 %v1130_v27, %v1075_v59 }
 0x65a   : > { %1399 = vmatpush.msra.mxu3 %v1373_v58 }
 0x65b   : > { %1232 = vmatmul.f32.gmra.mxu0 %v1156_v39 }
 0x65c   : > { %1400 = vmatpush.msra.mxu3 %v1372_v51  ;;  %v1620_v51 = vld [vmem:[%s2222_s3 + $0x8] ss:$0 sm:$0xff] }
 0x65e   : > { %1401 = vmatpush.msra.mxu3 %v1371_v56 }
 0x660   : > { %v1133_v26 = vpop.f32.mrf.mxu1  ;;  %1402 = vmatpush.msra.mxu3 %v1370_v25 }
 0x661   : > { %v1157_v54 = vadd.f32 %v1133_v26, %v1076_v34  ;;  %v2170_v34 = vld [vmem:[%s2222_s3 + $0x6] ss:$0 sm:$0xff] }
 0x662   : > { %1403 = vmatpush.msra.mxu3 %v1369_v30 }
 0x663   : > { %1235 = vmatmul.f32.gmra.mxu0 %v1157_v54 }
 0x668   : > { %v1136_v24 = vpop.f32.mrf.mxu1 }
 0x669   : > { %v1158_v59 = vadd.f32 %v1136_v24, %v1077_v57  ;;  %v1368_v24 = vld [vmem:[#allocation2 + $0x400] sm:$0xff] }
 0x66a   : > { %1404 = vmatpush.msra.mxu3 %v1368_v24 }
 0x66b   : > { %1238 = vmatmul.f32.gmra.mxu0 %v1158_v59 }
 0x670   : > { %v1139_v55 = vpop.f32.mrf.mxu1 }
 0x671   : > { %v1159_v16 = vadd.f32 %v1139_v55, %v1078_v13 }
 0x673   : > { %1241 = vmatmul.f32.gmra.mxu0 %v1159_v16 }
 0x678   : > { %v1142_v17 = vpop.f32.mrf.mxu1 }
 0x679   : > { %v1160_v12 = vadd.f32 %v1142_v17, %v1079_v23 }
 0x67b   : > { %1244 = vmatmul.f32.gmra.mxu0 %v1160_v12 }
 0x680   : > { %v1200_v28 = vpop.f32.mrf.mxu0 }
 0x681   : > { %v1201_v15 = vadd.f32 %v2170_v34, %v1200_v28 }
 0x683   : > { %v1248_v57 = vmax.f32 %v1201_v15, 0.0  ;;  %v1619_v15 = vld [vmem:[%s2222_s3 + $0x7] ss:$0 sm:$0xff] }
 0x685   : > { %1302 = vmatmul.f32.vlgmr.msra.gmra.mxu2 %v1248_v57 }
 0x688   : > { %v1203_v36 = vpop.f32.mrf.mxu0 }
 0x689   : > { %v1204_v22 = vadd.f32 %v2170_v34, %v1203_v36 }
 0x68b   : > { %v1249_v13 = vmax.f32 %v1204_v22, 0.0 }
 0x68d   : > { %1305 = vmatmul.f32.gmra.mxu2 %v1249_v13 }
 0x690   : > { %v1206_v18 = vpop.f32.mrf.mxu0 }
 0x691   : > { %v1207_v11 = vadd.f32 %v2170_v34, %v1206_v18 }
 0x693   : > { %v1250_v23 = vmax.f32 %v1207_v11, 0.0 }
 0x695   : > { %1308 = vmatmul.f32.gmra.mxu2 %v1250_v23 }
 0x698   : > { %v1209_v19 = vpop.f32.mrf.mxu0 }
 0x699   : > { %v1210_v20 = vadd.f32 %v2170_v34, %v1209_v19 }
 0x69b   : > { %v1251_v14 = vmax.f32 %v1210_v20, 0.0 }
 0x69d   : > { %1311 = vmatmul.f32.gmra.mxu2 %v1251_v14 }
 0x6a0   : > { %v1212_v21 = vpop.f32.mrf.mxu0 }
 0x6a1   : > { %v1213_v5 = vadd.f32 %v2170_v34, %v1212_v21 }
 0x6a3   : > { %v1252_v4 = vmax.f32 %v1213_v5, 0.0 }
 0x6a5   : > { %1314 = vmatmul.f32.gmra.mxu2 %v1252_v4 }
 0x6a8   : > { %v1215_v41 = vpop.f32.mrf.mxu0 }
 0x6a9   : > { %v1216_v45 = vadd.f32 %v2170_v34, %v1215_v41 }
 0x6ab   : > { %v1253_v40 = vmax.f32 %v1216_v45, 0.0 }
 0x6ad   : > { %1317 = vmatmul.f32.gmra.mxu2 %v1253_v40 }
 0x6b0   : > { %v1218_v43 = vpop.f32.mrf.mxu0 }
 0x6b1   : > { %v1219_v47 = vadd.f32 %v2170_v34, %v1218_v43 }
 0x6b3   : > { %v1254_v2 = vmax.f32 %v1219_v47, 0.0 }
 0x6b5   : > { %1320 = vmatmul.f32.gmra.mxu2 %v1254_v2 }
 0x6b8   : > { %v1221_v42 = vpop.f32.mrf.mxu0 }
 0x6b9   : > { %v1222_v48 = vadd.f32 %v2170_v34, %v1221_v42 }
 0x6bb   : > { %v1255_v37 = vmax.f32 %v1222_v48, 0.0 }
 0x6bd   : > { %1323 = vmatmul.f32.gmra.mxu2 %v1255_v37 }
 0x6c0   : > { %v1224_v10 = vpop.f32.mrf.mxu0 }
 0x6c1   : > { %v1225_v46 = vadd.f32 %v2170_v34, %v1224_v10 }
 0x6c3   : > { %v1256_v9 = vmax.f32 %v1225_v46, 0.0 }
 0x6c5   : > { %1326 = vmatmul.f32.gmra.mxu2 %v1256_v9 }
 0x6c8   : > { %v1227_v0 = vpop.f32.mrf.mxu0 }
 0x6c9   : > { %v1228_v33 = vadd.f32 %v2170_v34, %v1227_v0 }
 0x6cb   : > { %v1257_v44 = vmax.f32 %v1228_v33, 0.0 }
 0x6cd   : > { %1329 = vmatmul.f32.gmra.mxu2 %v1257_v44 }
 0x6d0   : > { %v1230_v6 = vpop.f32.mrf.mxu0 }
 0x6d1   : > { %v1231_v8 = vadd.f32 %v2170_v34, %v1230_v6 }
 0x6d3   : > { %v1258_v32 = vmax.f32 %v1231_v8, 0.0 }
 0x6d5   : > { %1332 = vmatmul.f32.gmra.mxu2 %v1258_v32 }
 0x6d8   : > { %v1233_v61 = vpop.f32.mrf.mxu0 }
 0x6d9   : > { %v1234_v7 = vadd.f32 %v2170_v34, %v1233_v61 }
 0x6db   : > { %v1259_v60 = vmax.f32 %v1234_v7, 0.0 }
 0x6dd   : > { %1335 = vmatmul.f32.gmra.mxu2 %v1259_v60 }
 0x6e0   : > { %v1236_v27 = vpop.f32.mrf.mxu0 }
 0x6e1   : > { %v1237_v39 = vadd.f32 %v2170_v34, %v1236_v27 }
 0x6e3   : > { %v1260_v53 = vmax.f32 %v1237_v39, 0.0 }
 0x6e5   : > { %1338 = vmatmul.f32.gmra.mxu2 %v1260_v53 }
 0x6e8   : > { %v1239_v26 = vpop.f32.mrf.mxu0 }
 0x6e9   : > { %v1240_v54 = vadd.f32 %v2170_v34, %v1239_v26 }
 0x6eb   : > { %v1261_v38 = vmax.f32 %v1240_v54, 0.0 }
 0x6ed   : > { %1341 = vmatmul.f32.gmra.mxu2 %v1261_v38 }
 0x6f0   : > { %v1242_v59 = vpop.f32.mrf.mxu0 }
 0x6f1   : > { %v1243_v55 = vadd.f32 %v2170_v34, %v1242_v59 }
 0x6f3   : > { %v1262_v16 = vmax.f32 %v1243_v55, 0.0 }
 0x6f5   : > { %1344 = vmatmul.f32.gmra.mxu2 %v1262_v16 }
 0x6f8   : > { %v1245_v17 = vpop.f32.mrf.mxu0 }
 0x6f9   : > { %v1246_v12 = vadd.f32 %v2170_v34, %v1245_v17 }
 0x6fb   : > { %v1263_v28 = vmax.f32 %v1246_v12, 0.0 }
 0x6fd   : > { %1347 = vmatmul.f32.gmra.mxu2 %v1263_v28 }
 0x708   : > { %v1303_v57 = vpop.f32.mrf.mxu2 }
 0x709   : > { %v1304_v36 = vadd.f32 %v1619_v15, %v1303_v57 }
 0x70b   : > { %v1351_v22 = vmax.f32 %v1304_v36, 0.0 }
 0x70d   : > { %1405 = vmatmul.f32.vlgmr.msra.gmra.mxu3 %v1351_v22 }
 0x710   : > { %v1306_v13 = vpop.f32.mrf.mxu2 }
 0x711   : > { %v1307_v18 = vadd.f32 %v1619_v15, %v1306_v13 }
 0x713   : > { %v1352_v11 = vmax.f32 %v1307_v18, 0.0 }
 0x715   : > { %1408 = vmatmul.f32.gmra.mxu3 %v1352_v11 }
 0x718   : > { %v1309_v23 = vpop.f32.mrf.mxu2 }
 0x719   : > { %v1310_v19 = vadd.f32 %v1619_v15, %v1309_v23 }
 0x71b   : > { %v1353_v20 = vmax.f32 %v1310_v19, 0.0 }
 0x71d   : > { %1411 = vmatmul.f32.gmra.mxu3 %v1353_v20 }
 0x720   : > { %v1312_v14 = vpop.f32.mrf.mxu2 }
 0x721   : > { %v1313_v34 = vadd.f32 %v1619_v15, %v1312_v14 }
 0x723   : > { %v1354_v21 = vmax.f32 %v1313_v34, 0.0 }
 0x725   : > { %1414 = vmatmul.f32.gmra.mxu3 %v1354_v21 }
 0x728   : > { %v1315_v5 = vpop.f32.mrf.mxu2 }
 0x729   : > { %v1316_v4 = vadd.f32 %v1619_v15, %v1315_v5 }
 0x72b   : > { %v1355_v41 = vmax.f32 %v1316_v4, 0.0 }
 0x72d   : > { %1417 = vmatmul.f32.gmra.mxu3 %v1355_v41 }
 0x730   : > { %v1318_v45 = vpop.f32.mrf.mxu2 }
 0x731   : > { %v1319_v40 = vadd.f32 %v1619_v15, %v1318_v45 }
 0x733   : > { %v1356_v43 = vmax.f32 %v1319_v40, 0.0 }
 0x735   : > { %1420 = vmatmul.f32.gmra.mxu3 %v1356_v43 }
 0x738   : > { %v1321_v47 = vpop.f32.mrf.mxu2 }
 0x739   : > { %v1322_v2 = vadd.f32 %v1619_v15, %v1321_v47 }
 0x73b   : > { %v1357_v42 = vmax.f32 %v1322_v2, 0.0 }
 0x73d   : > { %1423 = vmatmul.f32.gmra.mxu3 %v1357_v42 }
 0x740   : > { %v1324_v48 = vpop.f32.mrf.mxu2 }
 0x741   : > { %v1325_v37 = vadd.f32 %v1619_v15, %v1324_v48 }
 0x743   : > { %v1358_v10 = vmax.f32 %v1325_v37, 0.0 }
 0x745   : > { %1426 = vmatmul.f32.gmra.mxu3 %v1358_v10 }
 0x748   : > { %v1327_v46 = vpop.f32.mrf.mxu2 }
 0x749   : > { %v1328_v9 = vadd.f32 %v1619_v15, %v1327_v46 }
 0x74b   : > { %v1359_v0 = vmax.f32 %v1328_v9, 0.0 }
 0x74d   : > { %1429 = vmatmul.f32.gmra.mxu3 %v1359_v0 }
 0x750   : > { %v1330_v33 = vpop.f32.mrf.mxu2 }
 0x751   : > { %v1331_v44 = vadd.f32 %v1619_v15, %v1330_v33 }
 0x753   : > { %v1360_v31 = vmax.f32 %v1331_v44, 0.0 }
 0x755   : > { %1432 = vmatmul.f32.gmra.mxu3 %v1360_v31 }
 0x758   : > { %v1333_v52 = vpop.f32.mrf.mxu2 }
 0x759   : > { %v1334_v6 = vadd.f32 %v1619_v15, %v1333_v52 }
 0x75b   : > { %v1361_v8 = vmax.f32 %v1334_v6, 0.0 }
 0x75d   : > { %1435 = vmatmul.f32.gmra.mxu3 %v1361_v8 }
 0x760   : > { %v1336_v63 = vpop.f32.mrf.mxu2 }
 0x761   : > { %v1337_v32 = vadd.f32 %v1619_v15, %v1336_v63 }
 0x763   : > { %v1362_v62 = vmax.f32 %v1337_v32, 0.0 }
 0x765   : > { %1438 = vmatmul.f32.gmra.mxu3 %v1362_v62 }
 0x768   : > { %v1339_v29 = vpop.f32.mrf.mxu2 }
 0x769   : > { %v1340_v1 = vadd.f32 %v1619_v15, %v1339_v29 }
 0x76b   : > { %v1363_v61 = vmax.f32 %v1340_v1, 0.0 }
 0x76d   : > { %1441 = vmatmul.f32.gmra.mxu3 %v1363_v61 }
 0x770   : > { %v1342_v7 = vpop.f32.mrf.mxu2 }
 0x771   : > { %v1343_v49 = vadd.f32 %v1619_v15, %v1342_v7 }
 0x773   : > { %v1364_v60 = vmax.f32 %v1343_v49, 0.0 }
 0x775   : > { %1444 = vmatmul.f32.gmra.mxu3 %v1364_v60 }
 0x778   : > { %v1345_v3 = vpop.f32.mrf.mxu2 }
 0x779   : > { %v1346_v50 = vadd.f32 %v1619_v15, %v1345_v3 }
 0x77b   : > { %v1365_v35 = vmax.f32 %v1346_v50, 0.0 }
 0x77d   : > { %1447 = vmatmul.f32.gmra.mxu3 %v1365_v35 }
 0x780   : > { %v1348_v58 = vpop.f32.mrf.mxu2 }
 0x781   : > { %v1349_v27 = vadd.f32 %v1619_v15, %v1348_v58 }
 0x783   : > { %v1366_v39 = vmax.f32 %v1349_v27, 0.0 }
 0x785   : > { %1450 = vmatmul.f32.gmra.mxu3 %v1366_v39 }
 0x790   : > { %v1406_v53 = vpop.f32.mrf.mxu3 }
 0x791   : > { %v1407_v56 = vadd.f32 %v1620_v51, %v1406_v53 }
 0x793   : > { %1454 = vst [vmem:[%s2198_s27] sm:$0xff] %v1407_v56 }
 0x798   : > { %v1409_v25 = vpop.f32.mrf.mxu3 }
 0x799   : > { %v1410_v26 = vadd.f32 %v1620_v51, %v1409_v25 }
 0x79b   : > { %1455 = vst [vmem:[%s2198_s27 + $0x8] sm:$0xff] %v1410_v26 }
 0x7a0   : > { %v1412_v54 = vpop.f32.mrf.mxu3 }
 0x7a1   : > { %v1413_v30 = vadd.f32 %v1620_v51, %v1412_v54 }
 0x7a3   : > { %1456 = vst [vmem:[%s2198_s27 + $0x10] sm:$0xff] %v1413_v30 }
 0x7a8   : > { %v1415_v38 = vpop.f32.mrf.mxu3 }
 0x7a9   : > { %v1416_v24 = vadd.f32 %v1620_v51, %v1415_v38 }
 0x7ab   : > { %1457 = vst [vmem:[%s2198_s27 + $0x18] sm:$0xff] %v1416_v24 }
 0x7b0   : > { %v1418_v59 = vpop.f32.mrf.mxu3 }
 0x7b1   : > { %v1419_v55 = vadd.f32 %v1620_v51, %v1418_v59 }
 0x7b3   : > { %1458 = vst [vmem:[%s2198_s27 + $0x20] sm:$0xff] %v1419_v55 }
 0x7b8   : > { %v1421_v16 = vpop.f32.mrf.mxu3 }
 0x7b9   : > { %v1422_v17 = vadd.f32 %v1620_v51, %v1421_v16 }
 0x7bb   : > { %1459 = vst [vmem:[%s2198_s27 + $0x28] sm:$0xff] %v1422_v17 }
 0x7c0   : > { %v1424_v12 = vpop.f32.mrf.mxu3 }
 0x7c1   : > { %v1425_v28 = vadd.f32 %v1620_v51, %v1424_v12 }
 0x7c3   : > { %1460 = vst [vmem:[%s2198_s27 + $0x30] sm:$0xff] %v1425_v28 }
 0x7c8   : > { %v1427_v15 = vpop.f32.mrf.mxu3 }
 0x7c9   : > { %v1428_v57 = vadd.f32 %v1620_v51, %v1427_v15 }
 0x7cb   : > { %1461 = vst [vmem:[%s2198_s27 + $0x38] sm:$0xff] %v1428_v57 }
 0x7d0   : > { %v1430_v36 = vpop.f32.mrf.mxu3 }
 0x7d1   : > { %v1431_v22 = vadd.f32 %v1620_v51, %v1430_v36 }
 0x7d3   : > { %1462 = vst [vmem:[%s2198_s27 + $0x40] sm:$0xff] %v1431_v22 }
 0x7d8   : > { %v1433_v13 = vpop.f32.mrf.mxu3 }
 0x7d9   : > { %v1434_v18 = vadd.f32 %v1620_v51, %v1433_v13 }
 0x7db   : > { %1463 = vst [vmem:[%s2198_s27 + $0x48] sm:$0xff] %v1434_v18 }
 0x7e0   : > { %v1436_v11 = vpop.f32.mrf.mxu3 }
 0x7e1   : > { %v1437_v23 = vadd.f32 %v1620_v51, %v1436_v11 }
 0x7e3   : > { %1464 = vst [vmem:[%s2198_s27 + $0x50] sm:$0xff] %v1437_v23 }
 0x7e8   : > { %v1439_v19 = vpop.f32.mrf.mxu3 }
 0x7e9   : > { %v1440_v20 = vadd.f32 %v1620_v51, %v1439_v19 }
 0x7eb   : > { %1465 = vst [vmem:[%s2198_s27 + $0x58] sm:$0xff] %v1440_v20 }
 0x7f0   : > { %v1442_v14 = vpop.f32.mrf.mxu3 }
 0x7f1   : > { %v1443_v34 = vadd.f32 %v1620_v51, %v1442_v14 }
 0x7f3   : > { %1466 = vst [vmem:[%s2198_s27 + $0x60] sm:$0xff] %v1443_v34 }
 0x7f8   : > { %v1445_v21 = vpop.f32.mrf.mxu3 }
 0x7f9   : > { %v1446_v5 = vadd.f32 %v1620_v51, %v1445_v21 }
 0x7fb   : > { %1467 = vst [vmem:[%s2198_s27 + $0x68] sm:$0xff] %v1446_v5 }
 0x800   : > { %v1448_v4 = vpop.f32.mrf.mxu3 }
 0x801   : > { %v1449_v41 = vadd.f32 %v1620_v51, %v1448_v4 }
 0x803   : > { %1468 = vst [vmem:[%s2198_s27 + $0x70] sm:$0xff] %v1449_v41 }
 0x808   : > { %v1451_v45 = vpop.f32.mrf.mxu3 }
 0x809   : > { %v1452_v40 = vadd.f32 %v1620_v51, %v1451_v45 }
 0x80b   : > { %1469 = vst [vmem:[%s2198_s27 + $0x78] sm:$0xff] %v1452_v40 }
 0x80c PF: > { %s15_s15 = sadd.s32 1, %s1677_s15  }
 0x80d   : > { %p12_p7 = scmp.ge.s32.totalorder %s15_s15, 4  }
 0x80f   :  { %14 = sbr.rel (!%p12_p7) target bundleno = 1 (0x1), region = 90 }
 0x814   :  { %1491 = vsyncpa [#allocation3], 1 }
 0x815   :  { %1493 = vsyncpa [#allocation3 + $0x1], 1 }

</bundles_post_ra>
